<compile_context>
chip_gen: v7x
topology: tpu7x:2x2x1
jax: 0.10.0
libtpu: 0.0.40
codegen_flags: <defaults>
</compile_context>

<pallas_src>
import jax
import jax.numpy as jnp
from jax.experimental import pallas as pl
from jax.experimental.pallas import tpu as pltpu

LANE = 128


def _round_up(x, m):
    return ((x + m - 1) // m) * m


def _make_down_kernel(B, H, W, Cinp, Cmidp, Coutp):
    """B images of (H, W) per grid step; channel dims pre-padded to lane
    multiples.  Fused: 2x2 maxpool -> conv1(+BN)+ReLU -> conv2(+BN)+ReLU."""
    M = B * H * W   # matmul M (row) dimension

    def conv3x3_relu(pad_ref, w_ref, b_ref, Ci, Co):
        # 3x3 "same" conv as 9 accumulated per-tap MXU matmuls read straight
        # from the zero-halo scratch (no im2col matrix materialised).
        # w_ref: (9, Ci, Co) bf16 with the BN scale already folded in.
        acc = None
        for ky in range(3):
            for kx in range(3):
                tap = pad_ref[:, ky:ky + H, kx:kx + W, :]
                tap = tap.reshape(M, Ci).astype(jnp.bfloat16)
                part = jnp.dot(tap, w_ref[ky * 3 + kx],
                               preferred_element_type=jnp.float32)
                acc = part if acc is None else acc + part
        # Folded-BN bias + ReLU epilogue (scale is already in the weights).
        return jnp.maximum(acc + b_ref[...], 0.0)

    def kernel(x_ref, w1_ref, b1_ref, w2_ref, b2_ref, o_ref,
               pad1_ref, pad2_ref):
        # Zero the pad scratches (1-px halo) exactly once: the interior is
        # fully overwritten every step, the border never is, and the scratch
        # persists across grid iterations (grid axis runs sequentially).
        @pl.when(pl.program_id(0) == 0)
        def _():
            pad1_ref[...] = jnp.zeros_like(pad1_ref)
            pad2_ref[...] = jnp.zeros_like(pad2_ref)

        # 2x2 max-pool: the pool window was hoisted to the two leading axes
        # by the wrapper, so the pool is an elementwise max of four slabs.
        xp = jnp.maximum(
            jnp.maximum(x_ref[0, 0], x_ref[0, 1]),
            jnp.maximum(x_ref[1, 0], x_ref[1, 1]))      # (B, H, W, Cinp) f32

        # conv1 -> BN1 -> ReLU (activation never leaves VMEM/vregs)
        pad1_ref[:, 1:1 + H, 1:1 + W, :] = xp
        y1 = conv3x3_relu(pad1_ref, w1_ref, b1_ref, Cinp, Cmidp)  # (M, Cmidp)

        # conv2 -> BN2 -> ReLU
        pad2_ref[:, 1:1 + H, 1:1 + W, :] = y1.reshape(B, H, W, Cmidp)
        y2 = conv3x3_relu(pad2_ref, w2_ref, b2_ref, Cmidp, Coutp)  # (M, Coutp)

        # Lane-dense (Coutp is a multiple of 128) unmasked output store.
        o_ref[...] = y2.reshape(B, H, W, Coutp)

    return kernel


def down_forward(x_nchw, params):
    """Forward of `Down`. x_nchw: (N, Cin, H, W) f32 -> (N, Cout, H/2, W/2)."""
    w1, s1, b1, w2, s2, b2 = params   # w: HWIO (3,3,Ci,Co) f32; s/b: (1,C) f32
    N, Cin, H, W = x_nchw.shape
    assert H % 2 == 0 and W % 2 == 0
    H2, W2 = H // 2, W // 2
    Cmid, Cout = w1.shape[-1], w2.shape[-1]

    # Lane-dense channel padding (multiples of 128).
    Cinp = _round_up(Cin, LANE)
    Cmidp = _round_up(Cmid, LANE)
    Coutp = _round_up(Cout, LANE)

    # Several batch elements per grid step: amortises per-step overhead and
    # makes the matmul M dim (= b_tile*H2*W2) 128-aligned at demo shapes.
    b_tile = 1
    for b in range(1, min(N, 8) + 1):
        if N % b == 0:
            b_tile = b

    # One XLA copy: channel pad + NCHW->NHWC + hoist the 2x2 pool window to
    # the two leading axes: (2, 2, N, H2, W2, Cinp).
    xh = jnp.pad(x_nchw, ((0, 0), (0, Cinp - Cin), (0, 0), (0, 0)))
    xh = xh.reshape(N, Cinp, H2, 2, W2, 2).transpose(3, 5, 0, 2, 4, 1)

    # Fold the BN scale into the conv weights (f32), zero-pad channels, fold
    # the 3x3 taps into a leading axis and cast to bf16 for the MXU.
    def prep_w(w, s, cip, cop):
        wf = w * s.reshape(1, 1, 1, -1)
        wf = jnp.pad(wf, ((0, 0), (0, 0),
                          (0, cip - w.shape[2]), (0, cop - w.shape[3])))
        return wf.reshape(9, cip, cop).astype(jnp.bfloat16)

    w1m = prep_w(w1, s1, Cinp, Cmidp)
    w2m = prep_w(w2, s2, Cmidp, Coutp)
    b1p = jnp.pad(b1, ((0, 0), (0, Cmidp - Cmid)))
    b2p = jnp.pad(b2, ((0, 0), (0, Coutp - Cout)))

    y = pl.pallas_call(
        _make_down_kernel(b_tile, H2, W2, Cinp, Cmidp, Coutp),
        out_shape=jax.ShapeDtypeStruct((N, H2, W2, Coutp), jnp.float32),
        grid_spec=pltpu.PrefetchScalarGridSpec(
            num_scalar_prefetch=0,
            grid=(N // b_tile,),
            in_specs=[
                pl.BlockSpec((2, 2, b_tile, H2, W2, Cinp),
                             lambda n: (0, 0, n, 0, 0, 0)),
                pl.BlockSpec((9, Cinp, Cmidp), lambda n: (0, 0, 0)),
                pl.BlockSpec((1, Cmidp), lambda n: (0, 0)),
                pl.BlockSpec((9, Cmidp, Coutp), lambda n: (0, 0, 0)),
                pl.BlockSpec((1, Coutp), lambda n: (0, 0)),
            ],
            out_specs=pl.BlockSpec((b_tile, H2, W2, Coutp),
                                   lambda n: (n, 0, 0, 0)),
            scratch_shapes=[
                pltpu.VMEM((b_tile, H2 + 2, W2 + 2, Cinp), jnp.float32),
                pltpu.VMEM((b_tile, H2 + 2, W2 + 2, Cmidp), jnp.float32),
            ],
        ),
        compiler_params=pltpu.CompilerParams(
            # The pad-scratch halo is zeroed only on step 0 and relied upon
            # afterwards, so the grid axis must execute sequentially.
            dimension_semantics=("arbitrary",)),
    )(xh, w1m, b1p, w2m, b2p)

    # Drop channel padding + NHWC -> NCHW in one XLA copy.
    return jnp.transpose(y[..., :Cout], (0, 3, 1, 2))


def down_reference(x_nchw, params):
    """Pure-JAX f32 reference (eval-mode BN), for a loose correctness check."""
    w1, s1, b1, w2, s2, b2 = params
    N, C, H, W = x_nchw.shape
    xp = jnp.max(x_nchw.reshape(N, C, H // 2, 2, W // 2, 2), axis=(3, 5))

    def conv_bn_relu(x, w, s, b):
        y = jax.lax.conv_general_dilated(
            x, w, window_strides=(1, 1), padding="SAME",
            dimension_numbers=("NCHW", "HWIO", "NCHW"))
        y = y * s.reshape(1, -1, 1, 1) + b.reshape(1, -1, 1, 1)
        return jnp.maximum(y, 0.0)

    return conv_bn_relu(conv_bn_relu(xp, w1, s1, b1), w2, s2, b2)


def init_params(key, in_channels, out_channels, mid_channels=None):
    """Deterministic parameters matching the module's shapes (eval-mode BN)."""
    if mid_channels is None:
        mid_channels = out_channels
    k1, k2 = jax.random.split(key)

    def conv_w(k, cin, cout):
        # PyTorch Conv2d weight layout (Cout, Cin, 3, 3); convert to HWIO.
        w = jax.random.normal(k, (cout, cin, 3, 3), jnp.float32) * 0.1
        return jnp.transpose(w, (2, 3, 1, 0))  # (3, 3, Cin, Cout)

    def bn_affine(c, salt):
        # Deterministic BatchNorm2d params, folded to scale/bias (eval mode).
        i = jnp.arange(c, dtype=jnp.float32)
        gamma = 1.0 + 0.05 * i
        beta = 0.01 * (i + salt)
        running_mean = 0.02 * i
        running_var = 1.0 + 0.03 * i
        eps = 1e-5
        scale = gamma / jnp.sqrt(running_var + eps)
        bias = beta - running_mean * scale
        return scale.reshape(1, c), bias.reshape(1, c)

    w1 = conv_w(k1, in_channels, mid_channels)
    s1, b1 = bn_affine(mid_channels, 1.0)
    w2 = conv_w(k2, mid_channels, out_channels)
    s2, b2 = bn_affine(out_channels, 2.0)
    return (w1, s1, b1, w2, s2, b2)


if __name__ == "__main__":
    key = jax.random.PRNGKey(0)
    kx, kp = jax.random.split(key)

    N, Cin, H, W = 2, 4, 16, 16
    Cout = 8
    x = jax.random.normal(kx, (N, Cin, H, W), jnp.float32)   # NCHW, like PyTorch
    params = init_params(kp, Cin, Cout)

    y = jax.jit(down_forward)(x, params)
    y = jax.block_until_ready(y)
    assert y.shape == (N, Cout, H // 2, W // 2), y.shape
    assert bool(jnp.all(jnp.isfinite(y)))

    # Loose tolerance: matmul inputs are bf16 on the MXU (f32 accumulate).
    ref = down_reference(x, params)
    max_err = float(jnp.max(jnp.abs(y - ref)))
    assert max_err < 0.1, max_err

    print("KERNEL_OK")
</pallas_src>

<mosaic_0001>
module attributes {stable_mosaic.version = 11 : i64} {
  func.func @kernel(%arg0: i32, %arg1: memref<2x2x2x8x8x128xf32, #tpu.memory_space<vmem>>, %arg2: memref<9x128x128xbf16, #tpu.memory_space<vmem>>, %arg3: memref<1x128xf32, #tpu.memory_space<vmem>>, %arg4: memref<9x128x128xbf16, #tpu.memory_space<vmem>>, %arg5: memref<1x128xf32, #tpu.memory_space<vmem>>, %arg6: memref<2x8x8x128xf32, #tpu.memory_space<vmem>>, %arg7: memref<2x10x10x128xf32, #tpu.memory_space<vmem>>, %arg8: memref<2x10x10x128xf32, #tpu.memory_space<vmem>>) attributes {dimension_semantics = [#tpu.dimension_semantics<arbitrary>], iteration_bounds = array<i64: 1>, scalar_prefetch = 0 : i64, scratch_operands = 2 : i64, tpu.core_type = #tpu.core_type<tc>, window_params = [{transform_indices = @transform_0, window_bounds = array<i64: 2, 2, 2, 8, 8, 128>}, {pipeline_mode = #tpu.pipeline_mode<synchronous>, transform_indices = @transform_1, window_bounds = array<i64: 9, 128, 128>}, {pipeline_mode = #tpu.pipeline_mode<synchronous>, transform_indices = @transform_2, window_bounds = array<i64: 1, 128>}, {pipeline_mode = #tpu.pipeline_mode<synchronous>, transform_indices = @transform_3, window_bounds = array<i64: 9, 128, 128>}, {pipeline_mode = #tpu.pipeline_mode<synchronous>, transform_indices = @transform_4, window_bounds = array<i64: 1, 128>}, {transform_indices = @transform_5, window_bounds = array<i64: 2, 8, 8, 128>}]} {
    %c0_i32 = arith.constant 0 : i32
    %0 = arith.cmpi eq, %arg0, %c0_i32 : i32
    %1 = arith.extui %0 : i1 to i32
    %c0_i32_0 = arith.constant 0 : i32
    %2 = arith.cmpi ne, %1, %c0_i32_0 : i32
    scf.if %2 {
      %cst_177 = arith.constant 0.000000e+00 : f32
      %153 = vector.broadcast %cst_177 : f32 to vector<2x10x10x128xf32>
      %c0_178 = arith.constant 0 : index
      %c0_179 = arith.constant 0 : index
      %c0_180 = arith.constant 0 : index
      %c0_181 = arith.constant 0 : index
      %154 = vector.load %arg7[%c0_178, %c0_179, %c0_180, %c0_181] : memref<2x10x10x128xf32, #tpu.memory_space<vmem>>, vector<2x10x10x128xf32>
      tpu.vector_store %arg7[%c0_178, %c0_179, %c0_180, %c0_181], %153 {strides = array<i32>} : memref<2x10x10x128xf32, #tpu.memory_space<vmem>>, vector<2x10x10x128xf32>,
      %cst_182 = arith.constant 0.000000e+00 : f32
      %155 = vector.broadcast %cst_182 : f32 to vector<2x10x10x128xf32>
      %c0_183 = arith.constant 0 : index
      %c0_184 = arith.constant 0 : index
      %c0_185 = arith.constant 0 : index
      %c0_186 = arith.constant 0 : index
      %156 = vector.load %arg8[%c0_183, %c0_184, %c0_185, %c0_186] : memref<2x10x10x128xf32, #tpu.memory_space<vmem>>, vector<2x10x10x128xf32>
      tpu.vector_store %arg8[%c0_183, %c0_184, %c0_185, %c0_186], %155 {strides = array<i32>} : memref<2x10x10x128xf32, #tpu.memory_space<vmem>>, vector<2x10x10x128xf32>,
    } else {
    }
    %c0 = arith.constant 0 : index
    %c0_1 = arith.constant 0 : index
    %c0_2 = arith.constant 0 : index
    %c0_3 = arith.constant 0 : index
    %c0_4 = arith.constant 0 : index
    %c0_5 = arith.constant 0 : index
    %3 = vector.load %arg1[%c0, %c0_1, %c0_2, %c0_3, %c0_4, %c0_5] : memref<2x2x2x8x8x128xf32, #tpu.memory_space<vmem>>, vector<1x1x2x8x8x128xf32>
    %4 = vector.shape_cast %3 : vector<1x1x2x8x8x128xf32> to vector<2x8x8x128xf32>
    %c0_6 = arith.constant 0 : index
    %c1 = arith.constant 1 : index
    %c0_7 = arith.constant 0 : index
    %c0_8 = arith.constant 0 : index
    %c0_9 = arith.constant 0 : index
    %c0_10 = arith.constant 0 : index
    %5 = vector.load %arg1[%c0_6, %c1, %c0_7, %c0_8, %c0_9, %c0_10] : memref<2x2x2x8x8x128xf32, #tpu.memory_space<vmem>>, vector<1x1x2x8x8x128xf32>
    %6 = vector.shape_cast %5 : vector<1x1x2x8x8x128xf32> to vector<2x8x8x128xf32>
    %7 = arith.maximumf %4, %6 : vector<2x8x8x128xf32>
    %c1_11 = arith.constant 1 : index
    %c0_12 = arith.constant 0 : index
    %c0_13 = arith.constant 0 : index
    %c0_14 = arith.constant 0 : index
    %c0_15 = arith.constant 0 : index
    %c0_16 = arith.constant 0 : index
    %8 = vector.load %arg1[%c1_11, %c0_12, %c0_13, %c0_14, %c0_15, %c0_16] : memref<2x2x2x8x8x128xf32, #tpu.memory_space<vmem>>, vector<1x1x2x8x8x128xf32>
    %9 = vector.shape_cast %8 : vector<1x1x2x8x8x128xf32> to vector<2x8x8x128xf32>
    %c1_17 = arith.constant 1 : index
    %c1_18 = arith.constant 1 : index
    %c0_19 = arith.constant 0 : index
    %c0_20 = arith.constant 0 : index
    %c0_21 = arith.constant 0 : index
    %c0_22 = arith.constant 0 : index
    %10 = vector.load %arg1[%c1_17, %c1_18, %c0_19, %c0_20, %c0_21, %c0_22] : memref<2x2x2x8x8x128xf32, #tpu.memory_space<vmem>>, vector<1x1x2x8x8x128xf32>
    %11 = vector.shape_cast %10 : vector<1x1x2x8x8x128xf32> to vector<2x8x8x128xf32>
    %12 = arith.maximumf %9, %11 : vector<2x8x8x128xf32>
    %13 = arith.maximumf %7, %12 : vector<2x8x8x128xf32>
    %c0_23 = arith.constant 0 : index
    %c1_24 = arith.constant 1 : index
    %c1_25 = arith.constant 1 : index
    %c0_26 = arith.constant 0 : index
    %14 = vector.load %arg7[%c0_23, %c1_24, %c1_25, %c0_26] : memref<2x10x10x128xf32, #tpu.memory_space<vmem>>, vector<2x8x8x128xf32>
    tpu.vector_store %arg7[%c0_23, %c1_24, %c1_25, %c0_26], %13 {strides = array<i32>} : memref<2x10x10x128xf32, #tpu.memory_space<vmem>>, vector<2x8x8x128xf32>,
    %c0_27 = arith.constant 0 : index
    %c0_28 = arith.constant 0 : index
    %c0_29 = arith.constant 0 : index
    %c0_30 = arith.constant 0 : index
    %15 = vector.load %arg7[%c0_27, %c0_28, %c0_29, %c0_30] : memref<2x10x10x128xf32, #tpu.memory_space<vmem>>, vector<2x8x8x128xf32>
    %16 = vector.shape_cast %15 : vector<2x8x8x128xf32> to vector<128x128xf32>
    %17 = arith.truncf %16 : vector<128x128xf32> to vector<128x128xbf16>
    %c0_31 = arith.constant 0 : index
    %c0_32 = arith.constant 0 : index
    %c0_33 = arith.constant 0 : index
    %18 = vector.load %arg2[%c0_31, %c0_32, %c0_33] : memref<9x128x128xbf16, #tpu.memory_space<vmem>>, vector<1x128x128xbf16>
    %19 = vector.shape_cast %18 : vector<1x128x128xbf16> to vector<128x128xbf16>
    %cst = arith.constant dense<0.000000e+00> : vector<128x128xf32>
    %20 = tpu.matmul %17, %19, %cst {dimension_numbers = #tpu.dot_dimension_numbers<[1], [0], [0], [1], [0, 0, 1, 1], [], []>} : vector<128x128xbf16>, vector<128x128xbf16>, vector<128x128xf32> -> vector<128x128xf32>
    %c0_34 = arith.constant 0 : index
    %c0_35 = arith.constant 0 : index
    %c1_36 = arith.constant 1 : index
    %c0_37 = arith.constant 0 : index
    %21 = vector.load %arg7[%c0_34, %c0_35, %c1_36, %c0_37] : memref<2x10x10x128xf32, #tpu.memory_space<vmem>>, vector<2x8x8x128xf32>
    %22 = vector.shape_cast %21 : vector<2x8x8x128xf32> to vector<128x128xf32>
    %23 = arith.truncf %22 : vector<128x128xf32> to vector<128x128xbf16>
    %c1_38 = arith.constant 1 : index
    %c0_39 = arith.constant 0 : index
    %c0_40 = arith.constant 0 : index
    %24 = vector.load %arg2[%c1_38, %c0_39, %c0_40] : memref<9x128x128xbf16, #tpu.memory_space<vmem>>, vector<1x128x128xbf16>
    %25 = vector.shape_cast %24 : vector<1x128x128xbf16> to vector<128x128xbf16>
    %cst_41 = arith.constant dense<0.000000e+00> : vector<128x128xf32>
    %26 = tpu.matmul %23, %25, %cst_41 {dimension_numbers = #tpu.dot_dimension_numbers<[1], [0], [0], [1], [0, 0, 1, 1], [], []>} : vector<128x128xbf16>, vector<128x128xbf16>, vector<128x128xf32> -> vector<128x128xf32>
    %27 = arith.addf %20, %26 : vector<128x128xf32>
    %c0_42 = arith.constant 0 : index
    %c0_43 = arith.constant 0 : index
    %c2 = arith.constant 2 : index
    %c0_44 = arith.constant 0 : index
    %28 = vector.load %arg7[%c0_42, %c0_43, %c2, %c0_44] : memref<2x10x10x128xf32, #tpu.memory_space<vmem>>, vector<2x8x8x128xf32>
    %29 = vector.shape_cast %28 : vector<2x8x8x128xf32> to vector<128x128xf32>
    %30 = arith.truncf %29 : vector<128x128xf32> to vector<128x128xbf16>
    %c2_45 = arith.constant 2 : index
    %c0_46 = arith.constant 0 : index
    %c0_47 = arith.constant 0 : index
    %31 = vector.load %arg2[%c2_45, %c0_46, %c0_47] : memref<9x128x128xbf16, #tpu.memory_space<vmem>>, vector<1x128x128xbf16>
    %32 = vector.shape_cast %31 : vector<1x128x128xbf16> to vector<128x128xbf16>
    %cst_48 = arith.constant dense<0.000000e+00> : vector<128x128xf32>
    %33 = tpu.matmul %30, %32, %cst_48 {dimension_numbers = #tpu.dot_dimension_numbers<[1], [0], [0], [1], [0, 0, 1, 1], [], []>} : vector<128x128xbf16>, vector<128x128xbf16>, vector<128x128xf32> -> vector<128x128xf32>
    %34 = arith.addf %27, %33 : vector<128x128xf32>
    %c0_49 = arith.constant 0 : index
    %c1_50 = arith.constant 1 : index
    %c0_51 = arith.constant 0 : index
    %c0_52 = arith.constant 0 : index
    %35 = vector.load %arg7[%c0_49, %c1_50, %c0_51, %c0_52] : memref<2x10x10x128xf32, #tpu.memory_space<vmem>>, vector<2x8x8x128xf32>
    %36 = vector.shape_cast %35 : vector<2x8x8x128xf32> to vector<128x128xf32>
    %37 = arith.truncf %36 : vector<128x128xf32> to vector<128x128xbf16>
    %c3 = arith.constant 3 : index
    %c0_53 = arith.constant 0 : index
    %c0_54 = arith.constant 0 : index
    %38 = vector.load %arg2[%c3, %c0_53, %c0_54] : memref<9x128x128xbf16, #tpu.memory_space<vmem>>, vector<1x128x128xbf16>
    %39 = vector.shape_cast %38 : vector<1x128x128xbf16> to vector<128x128xbf16>
    %cst_55 = arith.constant dense<0.000000e+00> : vector<128x128xf32>
    %40 = tpu.matmul %37, %39, %cst_55 {dimension_numbers = #tpu.dot_dimension_numbers<[1], [0], [0], [1], [0, 0, 1, 1], [], []>} : vector<128x128xbf16>, vector<128x128xbf16>, vector<128x128xf32> -> vector<128x128xf32>
    %41 = arith.addf %34, %40 : vector<128x128xf32>
    %c0_56 = arith.constant 0 : index
    %c1_57 = arith.constant 1 : index
    %c1_58 = arith.constant 1 : index
    %c0_59 = arith.constant 0 : index
    %42 = vector.load %arg7[%c0_56, %c1_57, %c1_58, %c0_59] : memref<2x10x10x128xf32, #tpu.memory_space<vmem>>, vector<2x8x8x128xf32>
    %43 = vector.shape_cast %42 : vector<2x8x8x128xf32> to vector<128x128xf32>
    %44 = arith.truncf %43 : vector<128x128xf32> to vector<128x128xbf16>
    %c4 = arith.constant 4 : index
    %c0_60 = arith.constant 0 : index
    %c0_61 = arith.constant 0 : index
    %45 = vector.load %arg2[%c4, %c0_60, %c0_61] : memref<9x128x128xbf16, #tpu.memory_space<vmem>>, vector<1x128x128xbf16>
    %46 = vector.shape_cast %45 : vector<1x128x128xbf16> to vector<128x128xbf16>
    %cst_62 = arith.constant dense<0.000000e+00> : vector<128x128xf32>
    %47 = tpu.matmul %44, %46, %cst_62 {dimension_numbers = #tpu.dot_dimension_numbers<[1], [0], [0], [1], [0, 0, 1, 1], [], []>} : vector<128x128xbf16>, vector<128x128xbf16>, vector<128x128xf32> -> vector<128x128xf32>
    %48 = arith.addf %41, %47 : vector<128x128xf32>
    %c0_63 = arith.constant 0 : index
    %c1_64 = arith.constant 1 : index
    %c2_65 = arith.constant 2 : index
    %c0_66 = arith.constant 0 : index
    %49 = vector.load %arg7[%c0_63, %c1_64, %c2_65, %c0_66] : memref<2x10x10x128xf32, #tpu.memory_space<vmem>>, vector<2x8x8x128xf32>
    %50 = vector.shape_cast %49 : vector<2x8x8x128xf32> to vector<128x128xf32>
    %51 = arith.truncf %50 : vector<128x128xf32> to vector<128x128xbf16>
    %c5 = arith.constant 5 : index
    %c0_67 = arith.constant 0 : index
    %c0_68 = arith.constant 0 : index
    %52 = vector.load %arg2[%c5, %c0_67, %c0_68] : memref<9x128x128xbf16, #tpu.memory_space<vmem>>, vector<1x128x128xbf16>
    %53 = vector.shape_cast %52 : vector<1x128x128xbf16> to vector<128x128xbf16>
    %cst_69 = arith.constant dense<0.000000e+00> : vector<128x128xf32>
    %54 = tpu.matmul %51, %53, %cst_69 {dimension_numbers = #tpu.dot_dimension_numbers<[1], [0], [0], [1], [0, 0, 1, 1], [], []>} : vector<128x128xbf16>, vector<128x128xbf16>, vector<128x128xf32> -> vector<128x128xf32>
    %55 = arith.addf %48, %54 : vector<128x128xf32>
    %c0_70 = arith.constant 0 : index
    %c2_71 = arith.constant 2 : index
    %c0_72 = arith.constant 0 : index
    %c0_73 = arith.constant 0 : index
    %56 = vector.load %arg7[%c0_70, %c2_71, %c0_72, %c0_73] : memref<2x10x10x128xf32, #tpu.memory_space<vmem>>, vector<2x8x8x128xf32>
    %57 = vector.shape_cast %56 : vector<2x8x8x128xf32> to vector<128x128xf32>
    %58 = arith.truncf %57 : vector<128x128xf32> to vector<128x128xbf16>
    %c6 = arith.constant 6 : index
    %c0_74 = arith.constant 0 : index
    %c0_75 = arith.constant 0 : index
    %59 = vector.load %arg2[%c6, %c0_74, %c0_75] : memref<9x128x128xbf16, #tpu.memory_space<vmem>>, vector<1x128x128xbf16>
    %60 = vector.shape_cast %59 : vector<1x128x128xbf16> to vector<128x128xbf16>
    %cst_76 = arith.constant dense<0.000000e+00> : vector<128x128xf32>
    %61 = tpu.matmul %58, %60, %cst_76 {dimension_numbers = #tpu.dot_dimension_numbers<[1], [0], [0], [1], [0, 0, 1, 1], [], []>} : vector<128x128xbf16>, vector<128x128xbf16>, vector<128x128xf32> -> vector<128x128xf32>
    %62 = arith.addf %55, %61 : vector<128x128xf32>
    %c0_77 = arith.constant 0 : index
    %c2_78 = arith.constant 2 : index
    %c1_79 = arith.constant 1 : index
    %c0_80 = arith.constant 0 : index
    %63 = vector.load %arg7[%c0_77, %c2_78, %c1_79, %c0_80] : memref<2x10x10x128xf32, #tpu.memory_space<vmem>>, vector<2x8x8x128xf32>
    %64 = vector.shape_cast %63 : vector<2x8x8x128xf32> to vector<128x128xf32>
    %65 = arith.truncf %64 : vector<128x128xf32> to vector<128x128xbf16>
    %c7 = arith.constant 7 : index
    %c0_81 = arith.constant 0 : index
    %c0_82 = arith.constant 0 : index
    %66 = vector.load %arg2[%c7, %c0_81, %c0_82] : memref<9x128x128xbf16, #tpu.memory_space<vmem>>, vector<1x128x128xbf16>
    %67 = vector.shape_cast %66 : vector<1x128x128xbf16> to vector<128x128xbf16>
    %cst_83 = arith.constant dense<0.000000e+00> : vector<128x128xf32>
    %68 = tpu.matmul %65, %67, %cst_83 {dimension_numbers = #tpu.dot_dimension_numbers<[1], [0], [0], [1], [0, 0, 1, 1], [], []>} : vector<128x128xbf16>, vector<128x128xbf16>, vector<128x128xf32> -> vector<128x128xf32>
    %69 = arith.addf %62, %68 : vector<128x128xf32>
    %c0_84 = arith.constant 0 : index
    %c2_85 = arith.constant 2 : index
    %c2_86 = arith.constant 2 : index
    %c0_87 = arith.constant 0 : index
    %70 = vector.load %arg7[%c0_84, %c2_85, %c2_86, %c0_87] : memref<2x10x10x128xf32, #tpu.memory_space<vmem>>, vector<2x8x8x128xf32>
    %71 = vector.shape_cast %70 : vector<2x8x8x128xf32> to vector<128x128xf32>
    %72 = arith.truncf %71 : vector<128x128xf32> to vector<128x128xbf16>
    %c8 = arith.constant 8 : index
    %c0_88 = arith.constant 0 : index
    %c0_89 = arith.constant 0 : index
    %73 = vector.load %arg2[%c8, %c0_88, %c0_89] : memref<9x128x128xbf16, #tpu.memory_space<vmem>>, vector<1x128x128xbf16>
    %74 = vector.shape_cast %73 : vector<1x128x128xbf16> to vector<128x128xbf16>
    %cst_90 = arith.constant dense<0.000000e+00> : vector<128x128xf32>
    %75 = tpu.matmul %72, %74, %cst_90 {dimension_numbers = #tpu.dot_dimension_numbers<[1], [0], [0], [1], [0, 0, 1, 1], [], []>} : vector<128x128xbf16>, vector<128x128xbf16>, vector<128x128xf32> -> vector<128x128xf32>
    %76 = arith.addf %69, %75 : vector<128x128xf32>
    %c0_91 = arith.constant 0 : index
    %c0_92 = arith.constant 0 : index
    %77 = vector.load %arg3[%c0_91, %c0_92] : memref<1x128xf32, #tpu.memory_space<vmem>>, vector<1x128xf32>
    %78 = vector.broadcast %77 : vector<1x128xf32> to vector<128x128xf32>
    %79 = arith.addf %76, %78 : vector<128x128xf32>
    %cst_93 = arith.constant 0.000000e+00 : f32
    %80 = vector.broadcast %cst_93 : f32 to vector<128x128xf32>
    %81 = arith.maximumf %79, %80 : vector<128x128xf32>
    %82 = vector.shape_cast %81 : vector<128x128xf32> to vector<2x8x8x128xf32>
    %c0_94 = arith.constant 0 : index
    %c1_95 = arith.constant 1 : index
    %c1_96 = arith.constant 1 : index
    %c0_97 = arith.constant 0 : index
    %83 = vector.load %arg8[%c0_94, %c1_95, %c1_96, %c0_97] : memref<2x10x10x128xf32, #tpu.memory_space<vmem>>, vector<2x8x8x128xf32>
    tpu.vector_store %arg8[%c0_94, %c1_95, %c1_96, %c0_97], %82 {strides = array<i32>} : memref<2x10x10x128xf32, #tpu.memory_space<vmem>>, vector<2x8x8x128xf32>,
    %c0_98 = arith.constant 0 : index
    %c0_99 = arith.constant 0 : index
    %c0_100 = arith.constant 0 : index
    %c0_101 = arith.constant 0 : index
    %84 = vector.load %arg8[%c0_98, %c0_99, %c0_100, %c0_101] : memref<2x10x10x128xf32, #tpu.memory_space<vmem>>, vector<2x8x8x128xf32>
    %85 = vector.shape_cast %84 : vector<2x8x8x128xf32> to vector<128x128xf32>
    %86 = arith.truncf %85 : vector<128x128xf32> to vector<128x128xbf16>
    %c0_102 = arith.constant 0 : index
    %c0_103 = arith.constant 0 : index
    %c0_104 = arith.constant 0 : index
    %87 = vector.load %arg4[%c0_102, %c0_103, %c0_104] : memref<9x128x128xbf16, #tpu.memory_space<vmem>>, vector<1x128x128xbf16>
    %88 = vector.shape_cast %87 : vector<1x128x128xbf16> to vector<128x128xbf16>
    %cst_105 = arith.constant dense<0.000000e+00> : vector<128x128xf32>
    %89 = tpu.matmul %86, %88, %cst_105 {dimension_numbers = #tpu.dot_dimension_numbers<[1], [0], [0], [1], [0, 0, 1, 1], [], []>} : vector<128x128xbf16>, vector<128x128xbf16>, vector<128x128xf32> -> vector<128x128xf32>
    %c0_106 = arith.constant 0 : index
    %c0_107 = arith.constant 0 : index
    %c1_108 = arith.constant 1 : index
    %c0_109 = arith.constant 0 : index
    %90 = vector.load %arg8[%c0_106, %c0_107, %c1_108, %c0_109] : memref<2x10x10x128xf32, #tpu.memory_space<vmem>>, vector<2x8x8x128xf32>
    %91 = vector.shape_cast %90 : vector<2x8x8x128xf32> to vector<128x128xf32>
    %92 = arith.truncf %91 : vector<128x128xf32> to vector<128x128xbf16>
    %c1_110 = arith.constant 1 : index
    %c0_111 = arith.constant 0 : index
    %c0_112 = arith.constant 0 : index
    %93 = vector.load %arg4[%c1_110, %c0_111, %c0_112] : memref<9x128x128xbf16, #tpu.memory_space<vmem>>, vector<1x128x128xbf16>
    %94 = vector.shape_cast %93 : vector<1x128x128xbf16> to vector<128x128xbf16>
    %cst_113 = arith.constant dense<0.000000e+00> : vector<128x128xf32>
    %95 = tpu.matmul %92, %94, %cst_113 {dimension_numbers = #tpu.dot_dimension_numbers<[1], [0], [0], [1], [0, 0, 1, 1], [], []>} : vector<128x128xbf16>, vector<128x128xbf16>, vector<128x128xf32> -> vector<128x128xf32>
    %96 = arith.addf %89, %95 : vector<128x128xf32>
    %c0_114 = arith.constant 0 : index
    %c0_115 = arith.constant 0 : index
    %c2_116 = arith.constant 2 : index
    %c0_117 = arith.constant 0 : index
    %97 = vector.load %arg8[%c0_114, %c0_115, %c2_116, %c0_117] : memref<2x10x10x128xf32, #tpu.memory_space<vmem>>, vector<2x8x8x128xf32>
    %98 = vector.shape_cast %97 : vector<2x8x8x128xf32> to vector<128x128xf32>
    %99 = arith.truncf %98 : vector<128x128xf32> to vector<128x128xbf16>
    %c2_118 = arith.constant 2 : index
    %c0_119 = arith.constant 0 : index
    %c0_120 = arith.constant 0 : index
    %100 = vector.load %arg4[%c2_118, %c0_119, %c0_120] : memref<9x128x128xbf16, #tpu.memory_space<vmem>>, vector<1x128x128xbf16>
    %101 = vector.shape_cast %100 : vector<1x128x128xbf16> to vector<128x128xbf16>
    %cst_121 = arith.constant dense<0.000000e+00> : vector<128x128xf32>
    %102 = tpu.matmul %99, %101, %cst_121 {dimension_numbers = #tpu.dot_dimension_numbers<[1], [0], [0], [1], [0, 0, 1, 1], [], []>} : vector<128x128xbf16>, vector<128x128xbf16>, vector<128x128xf32> -> vector<128x128xf32>
    %103 = arith.addf %96, %102 : vector<128x128xf32>
    %c0_122 = arith.constant 0 : index
    %c1_123 = arith.constant 1 : index
    %c0_124 = arith.constant 0 : index
    %c0_125 = arith.constant 0 : index
    %104 = vector.load %arg8[%c0_122, %c1_123, %c0_124, %c0_125] : memref<2x10x10x128xf32, #tpu.memory_space<vmem>>, vector<2x8x8x128xf32>
    %105 = vector.shape_cast %104 : vector<2x8x8x128xf32> to vector<128x128xf32>
    %106 = arith.truncf %105 : vector<128x128xf32> to vector<128x128xbf16>
    %c3_126 = arith.constant 3 : index
    %c0_127 = arith.constant 0 : index
    %c0_128 = arith.constant 0 : index
    %107 = vector.load %arg4[%c3_126, %c0_127, %c0_128] : memref<9x128x128xbf16, #tpu.memory_space<vmem>>, vector<1x128x128xbf16>
    %108 = vector.shape_cast %107 : vector<1x128x128xbf16> to vector<128x128xbf16>
    %cst_129 = arith.constant dense<0.000000e+00> : vector<128x128xf32>
    %109 = tpu.matmul %106, %108, %cst_129 {dimension_numbers = #tpu.dot_dimension_numbers<[1], [0], [0], [1], [0, 0, 1, 1], [], []>} : vector<128x128xbf16>, vector<128x128xbf16>, vector<128x128xf32> -> vector<128x128xf32>
    %110 = arith.addf %103, %109 : vector<128x128xf32>
    %c0_130 = arith.constant 0 : index
    %c1_131 = arith.constant 1 : index
    %c1_132 = arith.constant 1 : index
    %c0_133 = arith.constant 0 : index
    %111 = vector.load %arg8[%c0_130, %c1_131, %c1_132, %c0_133] : memref<2x10x10x128xf32, #tpu.memory_space<vmem>>, vector<2x8x8x128xf32>
    %112 = vector.shape_cast %111 : vector<2x8x8x128xf32> to vector<128x128xf32>
    %113 = arith.truncf %112 : vector<128x128xf32> to vector<128x128xbf16>
    %c4_134 = arith.constant 4 : index
    %c0_135 = arith.constant 0 : index
    %c0_136 = arith.constant 0 : index
    %114 = vector.load %arg4[%c4_134, %c0_135, %c0_136] : memref<9x128x128xbf16, #tpu.memory_space<vmem>>, vector<1x128x128xbf16>
    %115 = vector.shape_cast %114 : vector<1x128x128xbf16> to vector<128x128xbf16>
    %cst_137 = arith.constant dense<0.000000e+00> : vector<128x128xf32>
    %116 = tpu.matmul %113, %115, %cst_137 {dimension_numbers = #tpu.dot_dimension_numbers<[1], [0], [0], [1], [0, 0, 1, 1], [], []>} : vector<128x128xbf16>, vector<128x128xbf16>, vector<128x128xf32> -> vector<128x128xf32>
    %117 = arith.addf %110, %116 : vector<128x128xf32>
    %c0_138 = arith.constant 0 : index
    %c1_139 = arith.constant 1 : index
    %c2_140 = arith.constant 2 : index
    %c0_141 = arith.constant 0 : index
    %118 = vector.load %arg8[%c0_138, %c1_139, %c2_140, %c0_141] : memref<2x10x10x128xf32, #tpu.memory_space<vmem>>, vector<2x8x8x128xf32>
    %119 = vector.shape_cast %118 : vector<2x8x8x128xf32> to vector<128x128xf32>
    %120 = arith.truncf %119 : vector<128x128xf32> to vector<128x128xbf16>
    %c5_142 = arith.constant 5 : index
    %c0_143 = arith.constant 0 : index
    %c0_144 = arith.constant 0 : index
    %121 = vector.load %arg4[%c5_142, %c0_143, %c0_144] : memref<9x128x128xbf16, #tpu.memory_space<vmem>>, vector<1x128x128xbf16>
    %122 = vector.shape_cast %121 : vector<1x128x128xbf16> to vector<128x128xbf16>
    %cst_145 = arith.constant dense<0.000000e+00> : vector<128x128xf32>
    %123 = tpu.matmul %120, %122, %cst_145 {dimension_numbers = #tpu.dot_dimension_numbers<[1], [0], [0], [1], [0, 0, 1, 1], [], []>} : vector<128x128xbf16>, vector<128x128xbf16>, vector<128x128xf32> -> vector<128x128xf32>
    %124 = arith.addf %117, %123 : vector<128x128xf32>
    %c0_146 = arith.constant 0 : index
    %c2_147 = arith.constant 2 : index
    %c0_148 = arith.constant 0 : index
    %c0_149 = arith.constant 0 : index
    %125 = vector.load %arg8[%c0_146, %c2_147, %c0_148, %c0_149] : memref<2x10x10x128xf32, #tpu.memory_space<vmem>>, vector<2x8x8x128xf32>
    %126 = vector.shape_cast %125 : vector<2x8x8x128xf32> to vector<128x128xf32>
    %127 = arith.truncf %126 : vector<128x128xf32> to vector<128x128xbf16>
    %c6_150 = arith.constant 6 : index
    %c0_151 = arith.constant 0 : index
    %c0_152 = arith.constant 0 : index
    %128 = vector.load %arg4[%c6_150, %c0_151, %c0_152] : memref<9x128x128xbf16, #tpu.memory_space<vmem>>, vector<1x128x128xbf16>
    %129 = vector.shape_cast %128 : vector<1x128x128xbf16> to vector<128x128xbf16>
    %cst_153 = arith.constant dense<0.000000e+00> : vector<128x128xf32>
    %130 = tpu.matmul %127, %129, %cst_153 {dimension_numbers = #tpu.dot_dimension_numbers<[1], [0], [0], [1], [0, 0, 1, 1], [], []>} : vector<128x128xbf16>, vector<128x128xbf16>, vector<128x128xf32> -> vector<128x128xf32>
    %131 = arith.addf %124, %130 : vector<128x128xf32>
    %c0_154 = arith.constant 0 : index
    %c2_155 = arith.constant 2 : index
    %c1_156 = arith.constant 1 : index
    %c0_157 = arith.constant 0 : index
    %132 = vector.load %arg8[%c0_154, %c2_155, %c1_156, %c0_157] : memref<2x10x10x128xf32, #tpu.memory_space<vmem>>, vector<2x8x8x128xf32>
    %133 = vector.shape_cast %132 : vector<2x8x8x128xf32> to vector<128x128xf32>
    %134 = arith.truncf %133 : vector<128x128xf32> to vector<128x128xbf16>
    %c7_158 = arith.constant 7 : index
    %c0_159 = arith.constant 0 : index
    %c0_160 = arith.constant 0 : index
    %135 = vector.load %arg4[%c7_158, %c0_159, %c0_160] : memref<9x128x128xbf16, #tpu.memory_space<vmem>>, vector<1x128x128xbf16>
    %136 = vector.shape_cast %135 : vector<1x128x128xbf16> to vector<128x128xbf16>
    %cst_161 = arith.constant dense<0.000000e+00> : vector<128x128xf32>
    %137 = tpu.matmul %134, %136, %cst_161 {dimension_numbers = #tpu.dot_dimension_numbers<[1], [0], [0], [1], [0, 0, 1, 1], [], []>} : vector<128x128xbf16>, vector<128x128xbf16>, vector<128x128xf32> -> vector<128x128xf32>
    %138 = arith.addf %131, %137 : vector<128x128xf32>
    %c0_162 = arith.constant 0 : index
    %c2_163 = arith.constant 2 : index
    %c2_164 = arith.constant 2 : index
    %c0_165 = arith.constant 0 : index
    %139 = vector.load %arg8[%c0_162, %c2_163, %c2_164, %c0_165] : memref<2x10x10x128xf32, #tpu.memory_space<vmem>>, vector<2x8x8x128xf32>
    %140 = vector.shape_cast %139 : vector<2x8x8x128xf32> to vector<128x128xf32>
    %141 = arith.truncf %140 : vector<128x128xf32> to vector<128x128xbf16>
    %c8_166 = arith.constant 8 : index
    %c0_167 = arith.constant 0 : index
    %c0_168 = arith.constant 0 : index
    %142 = vector.load %arg4[%c8_166, %c0_167, %c0_168] : memref<9x128x128xbf16, #tpu.memory_space<vmem>>, vector<1x128x128xbf16>
    %143 = vector.shape_cast %142 : vector<1x128x128xbf16> to vector<128x128xbf16>
    %cst_169 = arith.constant dense<0.000000e+00> : vector<128x128xf32>
    %144 = tpu.matmul %141, %143, %cst_169 {dimension_numbers = #tpu.dot_dimension_numbers<[1], [0], [0], [1], [0, 0, 1, 1], [], []>} : vector<128x128xbf16>, vector<128x128xbf16>, vector<128x128xf32> -> vector<128x128xf32>
    %145 = arith.addf %138, %144 : vector<128x128xf32>
    %c0_170 = arith.constant 0 : index
    %c0_171 = arith.constant 0 : index
    %146 = vector.load %arg5[%c0_170, %c0_171] : memref<1x128xf32, #tpu.memory_space<vmem>>, vector<1x128xf32>
    %147 = vector.broadcast %146 : vector<1x128xf32> to vector<128x128xf32>
    %148 = arith.addf %145, %147 : vector<128x128xf32>
    %cst_172 = arith.constant 0.000000e+00 : f32
    %149 = vector.broadcast %cst_172 : f32 to vector<128x128xf32>
    %150 = arith.maximumf %148, %149 : vector<128x128xf32>
    %151 = vector.shape_cast %150 : vector<128x128xf32> to vector<2x8x8x128xf32>
    %c0_173 = arith.constant 0 : index
    %c0_174 = arith.constant 0 : index
    %c0_175 = arith.constant 0 : index
    %c0_176 = arith.constant 0 : index
    %152 = vector.load %arg6[%c0_173, %c0_174, %c0_175, %c0_176] : memref<2x8x8x128xf32, #tpu.memory_space<vmem>>, vector<2x8x8x128xf32>
    tpu.vector_store %arg6[%c0_173, %c0_174, %c0_175, %c0_176], %151 {strides = array<i32>} : memref<2x8x8x128xf32, #tpu.memory_space<vmem>>, vector<2x8x8x128xf32>,
    return
  }
  func.func @transform_0(%arg0: i32) -> (i32, i32, i32, i32, i32, i32) {
    %c0_i32 = arith.constant 0 : i32
    %c0_i32_0 = arith.constant 0 : i32
    %c0_i32_1 = arith.constant 0 : i32
    %c0_i32_2 = arith.constant 0 : i32
    %c0_i32_3 = arith.constant 0 : i32
    %c0_i32_4 = arith.constant 0 : i32
    return %c0_i32, %c0_i32_0, %arg0, %c0_i32_1, %c0_i32_2, %c0_i32_3 : i32, i32, i32, i32, i32, i32
  }
  func.func @transform_1(%arg0: i32) -> (i32, i32, i32) {
    %c0_i32 = arith.constant 0 : i32
    %c0_i32_0 = arith.constant 0 : i32
    %c0_i32_1 = arith.constant 0 : i32
    %c0_i32_2 = arith.constant 0 : i32
    return %c0_i32, %c0_i32_0, %c0_i32_1 : i32, i32, i32
  }
  func.func @transform_2(%arg0: i32) -> (i32, i32) {
    %c0_i32 = arith.constant 0 : i32
    %c0_i32_0 = arith.constant 0 : i32
    %c0_i32_1 = arith.constant 0 : i32
    return %c0_i32, %c0_i32_0 : i32, i32
  }
  func.func @transform_3(%arg0: i32) -> (i32, i32, i32) {
    %c0_i32 = arith.constant 0 : i32
    %c0_i32_0 = arith.constant 0 : i32
    %c0_i32_1 = arith.constant 0 : i32
    %c0_i32_2 = arith.constant 0 : i32
    return %c0_i32, %c0_i32_0, %c0_i32_1 : i32, i32, i32
  }
  func.func @transform_4(%arg0: i32) -> (i32, i32) {
    %c0_i32 = arith.constant 0 : i32
    %c0_i32_0 = arith.constant 0 : i32
    %c0_i32_1 = arith.constant 0 : i32
    return %c0_i32, %c0_i32_0 : i32, i32
  }
  func.func @transform_5(%arg0: i32) -> (i32, i32, i32, i32) {
    %c0_i32 = arith.constant 0 : i32
    %c0_i32_0 = arith.constant 0 : i32
    %c0_i32_1 = arith.constant 0 : i32
    %c0_i32_2 = arith.constant 0 : i32
    return %arg0, %c0_i32, %c0_i32_0, %c0_i32_1 : i32, i32, i32, i32
  }
}

</mosaic_0001>

<bundles_post_ra>
// kernel: down_forward.1
= control target key start
LH: loop header
LB: loop body
LE: loop exit
PB: predicated region body
PF: predicated region fallthrough
CT: control target
= control target key end

     0   :  { %v5640_v1 = vmov 0.0   ;;  %s7031_s1 = inlined_call_operand.vmem [shape: bf16[9,128,128], index: 1, kind: input, shape index: {}]   ;;  %s7032_s0 = inlined_call_operand.vmem [shape: f32[2,2,2,8,8,128], index: 0, kind: input, shape index: {}]   ;;  %s7033_s3 = inlined_call_operand.vmem [shape: bf16[9,128,128], index: 3, kind: input, shape index: {}]   ;;  %s7034_s2 = inlined_call_operand.vmem [shape: f32[1,128], index: 2, kind: input, shape index: {}]   ;;  %s7035_s4 = inlined_call_operand.vmem [shape: f32[1,128], index: 4, kind: input, shape index: {}]   ;;  %s7036_s5 = inlined_call_operand.vmem [shape: f32[2,8,8,128], index: 5, kind: output, shape index: {}]  }
   0x1   :  { %v5674_v0 = vld [vmem:[%s7031_s1 + $0x40] sm:$0xff]   ;;  %25 = vst [vmem:[#allocation2] sm:$0xff] %v5640_v1  ;;  %26 = vst [vmem:[#allocation2 + $0x8] sm:$0x3] %v5640_v1  ;;  %v5496_v2 = vld [vmem:[%s7031_s1 + $0x48] sm:$0xff]  }
   0x2   :  { %27 = vst [vmem:[#allocation2 + $0x10] sm:$0xff] %v5640_v1  ;;  %28 = vst [vmem:[#allocation2 + $0x18] sm:$0x3] %v5640_v1  ;;  %4662 = vmatprep.subr.bf16.mxu0 %v5674_v0  ;;  %v5497_v3 = vld [vmem:[%s7031_s1 + $0x50] sm:$0xff]   ;;  %v5498_v4 = vld [vmem:[%s7031_s1 + $0x58] sm:$0xff]  }
   0x3   :  { %29 = vst [vmem:[#allocation2 + $0x20] sm:$0xff] %v5640_v1  ;;  %30 = vst [vmem:[#allocation2 + $0x28] sm:$0x3] %v5640_v1  ;;  %4663 = vmatpush3.bf16.msra.mxu0 %v5674_v0  ;;  %v105_v5 = vld [vmem:[%s7032_s0] sm:$0xff]  ;;  %v106_v11 = vld [vmem:[%s7032_s0 + $0x8] sm:$0xff] }
   0x4   :  { %31 = vst [vmem:[#allocation2 + $0x30] sm:$0xff] %v5640_v1  ;;  %32 = vst [vmem:[#allocation2 + $0x38] sm:$0x3] %v5640_v1  ;;  %4664 = vmatprep.subr.bf16.mxu0 %v5496_v2  ;;  %v3924_v6 = vld [vmem:[%s7032_s0 + $0x80] sm:$0xff]  ;;  %v107_v14 = vld [vmem:[%s7032_s0 + $0x10] sm:$0xff] }
   0x5   :  { %33 = vst [vmem:[#allocation2 + $0x40] sm:$0xff] %v5640_v1  ;;  %34 = vst [vmem:[#allocation2 + $0x48] sm:$0x3] %v5640_v1  ;;  %v3940_v7 = vld [vmem:[%s7032_s0 + $0x100] sm:$0xff]  ;;  %v138_v8 = vmax.f32 %v105_v5, %v3924_v6  ;;  %v3925_v15 = vld [vmem:[%s7032_s0 + $0x88] sm:$0xff] }
   0x6   :  { %35 = vst [vmem:[#allocation2 + $0x50] sm:$0xff] %v5640_v1  ;;  %36 = vst [vmem:[#allocation2 + $0x58] sm:$0x3] %v5640_v1  ;;  %v3956_v9 = vld [vmem:[%s7032_s0 + $0x180] sm:$0xff]  ;;  %v3926_v16 = vld [vmem:[%s7032_s0 + $0x90] sm:$0xff]  ;;  %v139_v17 = vmax.f32 %v106_v11, %v3925_v15 }
   0x7   :  { %37 = vst [vmem:[#allocation2 + $0x60] sm:$0xff] %v5640_v1  ;;  %38 = vst [vmem:[#allocation2 + $0x68] sm:$0x3] %v5640_v1  ;;  %4665 = vmatpush3.bf16.msra.mxu0 %v5496_v2  ;;  %v5499_v12 = vld [vmem:[%s7031_s1 + $0x60] sm:$0xff]   ;;  %v188_v13 = vmax.f32 %v3940_v7, %v3956_v9  ;;  %v140_v18 = vmax.f32 %v107_v14, %v3926_v16  ;;  %v3941_v19 = vld [vmem:[%s7032_s0 + $0x108] sm:$0xff] }
   0x8   :  { %39 = vst [vmem:[#allocation2 + $0x70] sm:$0xff] %v5640_v1  ;;  %40 = vst [vmem:[#allocation2 + $0x78] sm:$0x3] %v5640_v1  ;;  %4666 = vmatprep.subr.bf16.mxu0 %v5497_v3  ;;  %v277_v10 = vld [vmem:[#allocation2 + $0x1] sm:$0xff]  ;;  %v3942_v20 = vld [vmem:[%s7032_s0 + $0x110] sm:$0xff] }
   0x9   :  { %41 = vst [vmem:[#allocation2 + $0x80] sm:$0xff] %v5640_v1  ;;  %42 = vst [vmem:[#allocation2 + $0x88] sm:$0x3] %v5640_v1  ;;  %v3957_v21 = vld [vmem:[%s7032_s0 + $0x188] sm:$0xff]  ;;  %v5803_v22 = vmax.f32 %v138_v8, %v188_v13  ;;  %v3958_v23 = vld [vmem:[%s7032_s0 + $0x190] sm:$0xff] }
   0xa   :  { %43 = vst [vmem:[#allocation2 + $0x90] sm:$0xff] %v5640_v1  ;;  %44 = vst [vmem:[#allocation2 + $0x98] sm:$0x3] %v5640_v1  ;;  %v189_v24 = vmax.f32 %v3941_v19, %v3957_v21  ;;  %v190_v25 = vmax.f32 %v3942_v20, %v3958_v23  ;;  %v5500_v26 = vld [vmem:[%s7031_s1 + $0x68] sm:$0xff]   ;;  %v108_v29 = vld [vmem:[%s7032_s0 + $0x18] sm:$0xff] }
   0xb   :  { %45 = vst [vmem:[#allocation2 + $0xa0] sm:$0xff] %v5640_v1  ;;  %46 = vst [vmem:[#allocation2 + $0xa8] sm:$0x3] %v5640_v1  ;;  %4667 = vmatpush3.bf16.msra.mxu0 %v5497_v3  ;;  %v293_v27 = vpack.c.bf16 %v5803_v22, %v277_v10  ;;  %v109_v30 = vld [vmem:[%s7032_s0 + $0x20] sm:$0xff]  ;;  %v3927_v32 = vld [vmem:[%s7032_s0 + $0x98] sm:$0xff] }
   0xc   :  { %47 = vst [vmem:[#allocation2 + $0xb0] sm:$0xff] %v5640_v1  ;;  %48 = vst [vmem:[#allocation2 + $0xb8] sm:$0x3] %v5640_v1  ;;  %4668 = vmatprep.subr.bf16.mxu0 %v5498_v4  ;;  %v5813_v28 = vmax.f32 %v139_v17, %v189_v24  ;;  %v5821_v31 = vmax.f32 %v140_v18, %v190_v25  ;;  %v3928_v33 = vld [vmem:[%s7032_s0 + $0xa0] sm:$0xff]  ;;  %v3943_v34 = vld [vmem:[%s7032_s0 + $0x118] sm:$0xff]  ;;  %v141_v35 = vmax.f32 %v108_v29, %v3927_v32 }
   0xd   :  { %49 = vst [vmem:[#allocation2 + $0xc0] sm:$0xff] %v5640_v1  ;;  %50 = vst [vmem:[#allocation2 + $0xc8] sm:$0x3] %v5640_v1  ;;  %4678 = vmatprep.mubr.bf16.mxu0 %v293_v27  ;;  %v142_v36 = vmax.f32 %v109_v30, %v3928_v33  ;;  %v3944_v37 = vld [vmem:[%s7032_s0 + $0x120] sm:$0xff]  ;;  %v3959_v38 = vld [vmem:[%s7032_s0 + $0x198] sm:$0xff] }
   0xe   :  { %51 = vst [vmem:[#allocation2 + $0xd0] sm:$0xff] %v5640_v1  ;;  %52 = vst [vmem:[#allocation2 + $0xd8] sm:$0x3] %v5640_v1  ;;  %v3960_v39 = vld [vmem:[%s7032_s0 + $0x1a0] sm:$0xff]  ;;  %v191_v40 = vmax.f32 %v3943_v34, %v3959_v38  ;;  %v110_v42 = vld [vmem:[%s7032_s0 + $0x28] sm:$0xff]  ;;  %v294_v27 = vpack.c.bf16 %v5821_v31, %v5813_v28 }
   0xf   :  { %53 = vst [vmem:[#allocation2 + $0xe0] sm:$0xff] %v5640_v1  ;;  %54 = vst [vmem:[#allocation2 + $0xe8] sm:$0x3] %v5640_v1  ;;  %4669 = vmatpush3.bf16.msra.mxu0 %v5498_v4  ;;  %v192_v41 = vmax.f32 %v3944_v37, %v3960_v39  ;;  %v111_v43 = vld [vmem:[%s7032_s0 + $0x30] sm:$0xff]  ;;  %v3929_v44 = vld [vmem:[%s7032_s0 + $0xa8] sm:$0xff] }
  0x10   :  { %55 = vst [vmem:[#allocation2 + $0xf0] sm:$0xff] %v5640_v1  ;;  %56 = vst [vmem:[#allocation2 + $0xf8] sm:$0x3] %v5640_v1  ;;  %4670 = vmatprep.subr.bf16.mxu0 %v5499_v12  ;;  %v3930_v45 = vld [vmem:[%s7032_s0 + $0xb0] sm:$0xff]  ;;  %v143_v46 = vmax.f32 %v110_v42, %v3929_v44  ;;  %v3945_v47 = vld [vmem:[%s7032_s0 + $0x128] sm:$0xff]  ;;  %v5861_v49 = vmax.f32 %v141_v35, %v191_v40 }
  0x11   :  { %57 = vst [vmem:[#allocation2 + $0x100] sm:$0xff] %v5640_v1  ;;  %58 = vst [vmem:[#allocation2 + $0x108] sm:$0x3] %v5640_v1  ;;  %v3946_v48 = vld [vmem:[%s7032_s0 + $0x130] sm:$0xff]  ;;  %v5863_v50 = vmax.f32 %v142_v36, %v192_v41  ;;  %v144_v51 = vmax.f32 %v111_v43, %v3930_v45  ;;  %v3961_v52 = vld [vmem:[%s7032_s0 + $0x1a8] sm:$0xff]  ;;  %v1028_v41 = vpack.c.bf16 %v5813_v28, %v5803_v22 }
  0x12   :  { %59 = vst [vmem:[#allocation2 + $0x110] sm:$0xff] %v5640_v1  ;;  %60 = vst [vmem:[#allocation2 + $0x118] sm:$0x3] %v5640_v1  ;;  %v3962_v53 = vld [vmem:[%s7032_s0 + $0x1b0] sm:$0xff]  ;;  %v193_v55 = vmax.f32 %v3945_v47, %v3961_v52  ;;  %v113_v57 = vld [vmem:[%s7032_s0 + $0x40] sm:$0xff]  ;;  %v1029_v42 = vpack.c.bf16 %v5861_v49, %v5821_v31 }
  0x13   :  { %61 = vst [vmem:[#allocation2 + $0x120] sm:$0xff] %v5640_v1  ;;  %62 = vst [vmem:[#allocation2 + $0x128] sm:$0x3] %v5640_v1  ;;  %4671 = vmatpush3.bf16.msra.mxu0 %v5499_v12  ;;  %v5501_v54 = vld [vmem:[%s7031_s1 + $0x70] sm:$0xff]   ;;  %v194_v56 = vmax.f32 %v3946_v48, %v3962_v53  ;;  %v3932_v60 = vld [vmem:[%s7032_s0 + $0xc0] sm:$0xff]  ;;  %v295_v30 = vpack.c.bf16 %v5863_v50, %v5861_v49 }
  0x14   :  { %63 = vst [vmem:[#allocation2 + $0x130] sm:$0xff] %v5640_v1  ;;  %64 = vst [vmem:[#allocation2 + $0x138] sm:$0x3] %v5640_v1  ;;  %4672 = vmatprep.subr.bf16.mxu0 %v5500_v26  ;;  %v5879_v58 = vmax.f32 %v143_v46, %v193_v55  ;;  %v3948_v61 = vld [vmem:[%s7032_s0 + $0x140] sm:$0xff]  ;;  %v5502_v63 = vld [vmem:[%s7031_s1 + $0x78] sm:$0xff]   ;;  %v146_v0 = vmax.f32 %v113_v57, %v3932_v60 }
  0x15   :  { %65 = vst [vmem:[#allocation3] sm:$0xff] %v5640_v1  ;;  %66 = vst [vmem:[#allocation3 + $0x8] sm:$0x3] %v5640_v1  ;;  %v5881_v59 = vmax.f32 %v144_v51, %v194_v56  ;;  %v3964_v62 = vld [vmem:[%s7032_s0 + $0x1c0] sm:$0xff]  ;;  %v114_v3 = vld [vmem:[%s7032_s0 + $0x48] sm:$0xff] }
  0x16   :  { %67 = vst [vmem:[#allocation3 + $0x10] sm:$0xff] %v5640_v1  ;;  %68 = vst [vmem:[#allocation3 + $0x18] sm:$0x3] %v5640_v1  ;;  %v196_v2 = vmax.f32 %v3948_v61, %v3964_v62  ;;  %v115_v4 = vld [vmem:[%s7032_s0 + $0x50] sm:$0xff]  ;;  %v3933_v5 = vld [vmem:[%s7032_s0 + $0xc8] sm:$0xff] }
  0x17   :  { %69 = vst [vmem:[#allocation3 + $0x20] sm:$0xff] %v5640_v1  ;;  %70 = vst [vmem:[#allocation3 + $0x28] sm:$0x3] %v5640_v1  ;;  %4673 = vmatpush3.bf16.msra.mxu0 %v5500_v26  ;;  %v3934_v6 = vld [vmem:[%s7032_s0 + $0xd0] sm:$0xff]  ;;  %v3949_v7 = vld [vmem:[%s7032_s0 + $0x148] sm:$0xff]  ;;  %v147_v9 = vmax.f32 %v114_v3, %v3933_v5  ;;  %v296_v61 = vpack.c.bf16 %v5881_v59, %v5879_v58 }
  0x18   :  { %71 = vst [vmem:[#allocation3 + $0x30] sm:$0xff] %v5640_v1  ;;  %72 = vst [vmem:[#allocation3 + $0x38] sm:$0x3] %v5640_v1  ;;  %4674 = vmatprep.subr.bf16.mxu0 %v5501_v54  ;;  %v5912_v8 = vmax.f32 %v146_v0, %v196_v2  ;;  %v148_v10 = vmax.f32 %v115_v4, %v3934_v6  ;;  %v3950_v11 = vld [vmem:[%s7032_s0 + $0x150] sm:$0xff]  ;;  %v3965_v12 = vld [vmem:[%s7032_s0 + $0x1c8] sm:$0xff] }
  0x19   :  { %73 = vst [vmem:[#allocation3 + $0x40] sm:$0xff] %v5640_v1  ;;  %74 = vst [vmem:[#allocation3 + $0x48] sm:$0x3] %v5640_v1  ;;  %v3966_v13 = vld [vmem:[%s7032_s0 + $0x1d0] sm:$0xff]  ;;  %v197_v14 = vmax.f32 %v3949_v7, %v3965_v12  ;;  %v5503_v16 = vld [vmem:[%s7031_s1] sm:$0xff]  }
  0x1a   :  { %75 = vst [vmem:[#allocation3 + $0x50] sm:$0xff] %v5640_v1  ;;  %76 = vst [vmem:[#allocation3 + $0x58] sm:$0x3] %v5640_v1  ;;  %v198_v15 = vmax.f32 %v3950_v11, %v3966_v13  ;;  %v116_v19 = vld [vmem:[%s7032_s0 + $0x58] sm:$0xff]  ;;  %v117_v20 = vld [vmem:[%s7032_s0 + $0x60] sm:$0xff] }
  0x1b   :  { %77 = vst [vmem:[#allocation3 + $0x60] sm:$0xff] %v5640_v1  ;;  %78 = vst [vmem:[#allocation3 + $0x68] sm:$0x3] %v5640_v1  ;;  %4675 = vmatpush3.bf16.msra.mxu0 %v5501_v54  ;;  %v5927_v17 = vmax.f32 %v147_v9, %v197_v14  ;;  %v3935_v21 = vld [vmem:[%s7032_s0 + $0xd8] sm:$0xff]  ;;  %v3936_v23 = vld [vmem:[%s7032_s0 + $0xe0] sm:$0xff] }
  0x1c   :  { %79 = vst [vmem:[#allocation3 + $0x70] sm:$0xff] %v5640_v1  ;;  %80 = vst [vmem:[#allocation3 + $0x78] sm:$0x3] %v5640_v1  ;;  %4676 = vmatprep.subr.bf16.mxu0 %v5502_v63  ;;  %v5929_v18 = vmax.f32 %v148_v10, %v198_v15  ;;  %v149_v24 = vmax.f32 %v116_v19, %v3935_v21  ;;  %v3951_v25 = vld [vmem:[%s7032_s0 + $0x158] sm:$0xff]  ;;  %v3952_v26 = vld [vmem:[%s7032_s0 + $0x160] sm:$0xff]  ;;  %v150_v32 = vmax.f32 %v117_v20, %v3936_v23 }
  0x1d   :  { %81 = vst [vmem:[#allocation3 + $0x80] sm:$0xff] %v5640_v1  ;;  %82 = vst [vmem:[#allocation3 + $0x88] sm:$0x3] %v5640_v1  ;;  %v5504_v29 = vld [vmem:[%s7031_s1 + $0x8] sm:$0xff]   ;;  %v3967_v33 = vld [vmem:[%s7032_s0 + $0x1d8] sm:$0xff] }
  0x1e   :  { %83 = vst [vmem:[#allocation3 + $0x90] sm:$0xff] %v5640_v1  ;;  %84 = vst [vmem:[#allocation3 + $0x98] sm:$0x3] %v5640_v1  ;;  %v3968_v34 = vld [vmem:[%s7032_s0 + $0x1e0] sm:$0xff]  ;;  %v118_v35 = vld [vmem:[%s7032_s0 + $0x68] sm:$0xff]  ;;  %v199_v36 = vmax.f32 %v3951_v25, %v3967_v33  ;;  %v298_v3 = vpack.c.bf16 %v5929_v18, %v5927_v17 }
  0x1f   :  { %85 = vst [vmem:[#allocation3 + $0xa0] sm:$0xff] %v5640_v1  ;;  %86 = vst [vmem:[#allocation3 + $0xa8] sm:$0x3] %v5640_v1  ;;  %4677 = vmatpush3.bf16.msra.mxu0 %v5502_v63  ;;  %v200_v37 = vmax.f32 %v3952_v26, %v3968_v34  ;;  %v119_v38 = vld [vmem:[%s7032_s0 + $0x70] sm:$0xff]  ;;  %v3937_v39 = vld [vmem:[%s7032_s0 + $0xe8] sm:$0xff]  ;;  %v1030_v63 = vpack.c.bf16 %v5879_v58, %v5863_v50 }
  0x20   :  { %87 = vst [vmem:[#allocation3 + $0xb0] sm:$0xff] %v5640_v1  ;;  %88 = vst [vmem:[#allocation3 + $0xb8] sm:$0x3] %v5640_v1  ;;  %v3938_v40 = vld [vmem:[%s7032_s0 + $0xf0] sm:$0xff]  ;;  %4694 = vmatprep.subr.bf16.mxu0 %v5503_v16  ;;  %v151_v43 = vmax.f32 %v118_v35, %v3937_v39  ;;  %v3953_v45 = vld [vmem:[%s7032_s0 + $0x168] sm:$0xff]  ;;  %v5989_v48 = vmax.f32 %v149_v24, %v199_v36 }
  0x21   :  { %89 = vst [vmem:[#allocation3 + $0xc0] sm:$0xff] %v5640_v1  ;;  %90 = vst [vmem:[#allocation3 + $0xc8] sm:$0x3] %v5640_v1  ;;  %v152_v44 = vmax.f32 %v119_v38, %v3938_v40  ;;  %v3954_v46 = vld [vmem:[%s7032_s0 + $0x170] sm:$0xff]  ;;  %v3969_v47 = vld [vmem:[%s7032_s0 + $0x1e8] sm:$0xff]  ;;  %v5991_v51 = vmax.f32 %v150_v32, %v200_v37 }
  0x22   :  { %91 = vst [vmem:[#allocation3 + $0xd0] sm:$0xff] %v5640_v1  ;;  %92 = vst [vmem:[#allocation3 + $0xd8] sm:$0x3] %v5640_v1  ;;  %v3970_v52 = vld [vmem:[%s7032_s0 + $0x1f0] sm:$0xff]  ;;  %v201_v53 = vmax.f32 %v3953_v45, %v3969_v47  ;;  %4679 = vmatmul.mubr.bf16.vlgmr.msra.gmra.mrb[0].mxu0 %v294_v27  ;;  %v285_v57 = vld [vmem:[#allocation2 + $0xa1] sm:$0xff] }
  0x23   :  { %93 = vst [vmem:[#allocation3 + $0xe0] sm:$0xff] %v5640_v1  ;;  %94 = vst [vmem:[#allocation3 + $0xe8] sm:$0x3] %v5640_v1  ;;  %v202_v54 = vmax.f32 %v3954_v46, %v3970_v52  ;;  %4695 = vmatpush3.bf16.msra.mxu0 %v5503_v16  ;;  %4682 = vmatprep.mubr.bf16.mxu0 %v295_v30  ;;  %v5505_v55 = vld [vmem:[%s7031_s1 + $0x10] sm:$0xff]   ;;  %v297_v62 = vpack.c.bf16 %v5912_v8, %v285_v57  ;;  %v5506_v0 = vld [vmem:[%s7031_s1 + $0x18] sm:$0xff]  }
  0x24   :  { %95 = vst [vmem:[#allocation3 + $0xf0] sm:$0xff] %v5640_v1  ;;  %96 = vst [vmem:[#allocation3 + $0xf8] sm:$0x3] %v5640_v1  ;;  %v6001_v56 = vmax.f32 %v151_v43, %v201_v53  ;;  %4696 = vmatprep.subr.bf16.mxu0 %v5504_v29  ;;  %v5507_v2 = vld [vmem:[%s7031_s1 + $0x20] sm:$0xff]   ;;  %v299_v4 = vpack.c.bf16 %v5991_v51, %v5989_v48  ;;  %v5508_v7 = vld [vmem:[%s7031_s1 + $0x28] sm:$0xff]  }
  0x25   :  { %97 = vst [vmem:[#allocation3 + $0x100] sm:$0xff] %v5640_v1  ;;  %98 = vst [vmem:[#allocation3 + $0x108] sm:$0x3] %v5640_v1  ;;  %v6003_v60 = vmax.f32 %v152_v44, %v202_v54  ;;  %v5509_v9 = vld [vmem:[%s7031_s1 + $0x30] sm:$0xff]   ;;  %v5510_v14 = vld [vmem:[%s7031_s1 + $0x38] sm:$0xff]  }
  0x26   :  { %99 = vst [vmem:[#allocation3 + $0x110] sm:$0xff] %v5640_v1  ;;  %100 = vst [vmem:[#allocation3 + $0x118] sm:$0x3] %v5640_v1  ;;  %v5511_v19 = vld [vmem:[%s7031_s1 + $0x80] sm:$0xff]   ;;  %v112_v32 = vld [vmem:[%s7032_s0 + $0x38] sm:$0xff] }
  0x27   :  { %101 = vst [vmem:[#allocation3 + $0x120] sm:$0xff] %v5640_v1  ;;  %102 = vst [vmem:[#allocation3 + $0x128] sm:$0x3] %v5640_v1  ;;  %4697 = vmatpush3.bf16.msra.mxu0 %v5504_v29  ;;  %v300_v11 = vpack.c.bf16 %v6003_v60, %v6001_v56  ;;  %v5512_v29 = vld [vmem:[%s7031_s1 + $0x88] sm:$0xff]   ;;  %v3931_v33 = vld [vmem:[%s7032_s0 + $0xb8] sm:$0xff] }
  0x28   :  { %103 = vst [vmem:[#allocation3 + $0x130] sm:$0xff] %v5640_v1  ;;  %104 = vst [vmem:[#allocation3 + $0x138] sm:$0x3] %v5640_v1  ;;  %4698 = vmatprep.subr.bf16.mxu0 %v5505_v55  ;;  %v145_v36 = vmax.f32 %v112_v32, %v3931_v33  ;;  %v3947_v37 = vld [vmem:[%s7032_s0 + $0x138] sm:$0xff]  ;;  %v5513_v44 = vld [vmem:[%s7031_s1 + $0x90] sm:$0xff]  }
  0x29   :  { %221 = vst [vmem:[#allocation2 + $0x11] sm:$0xff] %v5803_v22  ;;  %222 = vst [vmem:[#allocation2 + $0x21] sm:$0xff] %v5813_v28  ;;  %v3963_v38 = vld [vmem:[%s7032_s0 + $0x1b8] sm:$0xff]  ;;  %v5523_v34 = vld [vmem:[%s7031_s1 + $0xe0] sm:$0xff]  }
  0x2a   :  { %223 = vst [vmem:[#allocation2 + $0x31] sm:$0xff] %v5821_v31  ;;  %224 = vst [vmem:[#allocation2 + $0x41] sm:$0xff] %v5861_v49  ;;  %4683 = vmatmul.mubr.bf16.gmra.mrb[4].mxu0 %v296_v61  ;;  %v195_v43 = vmax.f32 %v3947_v37, %v3963_v38  ;;  %v120_v52 = vld [vmem:[%s7032_s0 + $0x78] sm:$0xff]  ;;  %v5519_v38 = vld [vmem:[%s7031_s1 + $0xc0] sm:$0xff]   ;;  %v7037_v49 = vpack.c.bf16 %v5927_v17, %v5912_v8 }
  0x2b   :  { %225 = vst [vmem:[#allocation2 + $0x51] sm:$0xff] %v5863_v50  ;;  %226 = vst [vmem:[#allocation2 + $0x61] sm:$0xff] %v5879_v58  ;;  %4699 = vmatpush3.bf16.msra.mxu0 %v5505_v55  ;;  %4686 = vmatprep.mubr.bf16.mxu0 %v297_v62  ;;  %v3939_v53 = vld [vmem:[%s7032_s0 + $0xf8] sm:$0xff]  ;;  %v5527_v5 = vld [vmem:[%s7031_s1 + $0x100] sm:$0xff]  }
  0x2c   :  { %227 = vst [vmem:[#allocation2 + $0x71] sm:$0xff] %v5881_v59  ;;  %229 = vst [vmem:[#allocation2 + $0xb1] sm:$0xff] %v5912_v8  ;;  %4700 = vmatprep.subr.bf16.mxu0 %v5506_v0  ;;  %v6100_v46 = vmax.f32 %v145_v36, %v195_v43  ;;  %v3955_v54 = vld [vmem:[%s7032_s0 + $0x178] sm:$0xff]  ;;  %v153_v62 = vmax.f32 %v120_v52, %v3939_v53  ;;  %v5537_v22 = vld [vmem:[%s7031_s1 + $0x150] sm:$0xff]   ;;  %v7039_v8 = vpack.c.bf16 %v6001_v56, %v5991_v51 }
  0x2d   :  { %230 = vst [vmem:[#allocation2 + $0xc1] sm:$0xff] %v5927_v17  ;;  %231 = vst [vmem:[#allocation2 + $0xd1] sm:$0xff] %v5929_v18  ;;  %v3971_v55 = vld [vmem:[%s7032_s0 + $0x1f8] sm:$0xff]  ;;  %v5539_v50 = vld [vmem:[%s7031_s1 + $0x160] sm:$0xff]  }
  0x2e   :  { %232 = vst [vmem:[#allocation2 + $0xe1] sm:$0xff] %v5989_v48  ;;  %233 = vst [vmem:[#allocation2 + $0xf1] sm:$0xff] %v5991_v51  ;;  %v5518_v43 = vld [vmem:[%s7031_s1 + $0xb8] sm:$0xff]   ;;  %v1031_v28 = vpack.c.bf16 %v6100_v46, %v5881_v59  ;;  %v5540_v58 = vld [vmem:[%s7031_s1 + $0x168] sm:$0xff]   ;;  %v7038_v59 = vpack.c.bf16 %v5989_v48, %v5929_v18 }
  0x2f   :  { %234 = vst [vmem:[#allocation2 + $0x101] sm:$0xff] %v6001_v56  ;;  %235 = vst [vmem:[#allocation2 + $0x111] sm:$0xff] %v6003_v60  ;;  %4701 = vmatpush3.bf16.msra.mxu0 %v5506_v0  ;;  %v203_v0 = vmax.f32 %v3955_v54, %v3971_v55  ;;  %v5517_v54 = vld [vmem:[%s7031_s1 + $0xb0] sm:$0xff]   ;;  %v608_v55 = vld [vmem:[#allocation2 + $0x2] sm:$0xff] }
  0x30   :  { %4702 = vmatprep.subr.bf16.mxu0 %v5507_v2  ;;  %v6032_v10 = vld [vmem:[#allocation2 + $0x10] sm:$0xff]  ;;  %v6043_v15 = vld [vmem:[#allocation2 + $0x20] sm:$0xff]  ;;  %228 = vst [vmem:[#allocation2 + $0x81] sm:$0xff] %v6100_v46  ;;  %v5538_v31 = vld [vmem:[%s7031_s1 + $0x158] sm:$0xff]  }
  0x31   :  { %v253_v12 = vpack.c.bf16 %v6032_v10, %v5640_v1  ;;  %v6045_v16 = vld [vmem:[#allocation2 + $0x30] sm:$0xff]  ;;  %v6050_v20 = vld [vmem:[#allocation2 + $0x40] sm:$0xff]  ;;  %v826_v6 = vpack.c.bf16 %v6043_v15, %v6032_v10  ;;  %v5542_v18 = vld [vmem:[%s7031_s1 + $0x178] sm:$0xff]  }
  0x32   :  { %4687 = vmatmul.mubr.bf16.gmra.mrb[8].mxu0 %v298_v3  ;;  %v6052_v21 = vld [vmem:[#allocation2 + $0x50] sm:$0xff]  ;;  %v6056_v24 = vld [vmem:[#allocation2 + $0x22] sm:$0xff]  ;;  %v6062_v26 = vpack.c.bf16 %v6045_v16, %v6043_v15 }
  0x33   :  { %4703 = vmatpush3.bf16.msra.mxu0 %v5507_v2  ;;  %4690 = vmatprep.mubr.bf16.mxu0 %v299_v4  ;;  %v6054_v23 = vld [vmem:[#allocation2 + $0x12] sm:$0xff]  ;;  %v6064_v27 = vld [vmem:[#allocation2 + $0x42] sm:$0xff]  ;;  %v6071_v30 = vpack.c.bf16 %v6052_v21, %v6050_v20 }
  0x34   :  { %4704 = vmatprep.subr.bf16.mxu0 %v5508_v7  ;;  %v6058_v25 = vld [vmem:[#allocation2 + $0x32] sm:$0xff]  ;;  %v6089_v39 = vld [vmem:[#allocation2 + $0x60] sm:$0xff]  ;;  %v5528_v15 = vld [vmem:[%s7031_s1 + $0x108] sm:$0xff]   ;;  %v7040_v48 = vpack.c.bf16 %v6056_v24, %v6054_v23 }
  0x35   :  { %v6091_v40 = vld [vmem:[#allocation2 + $0x70] sm:$0xff]  ;;  %v6121_v61 = vld [vmem:[#allocation2 + $0x62] sm:$0xff]  ;;  %v5514_v4 = vld [vmem:[%s7031_s1 + $0x98] sm:$0xff]   ;;  %v828_v10 = vpack.c.bf16 %v6089_v39, %v6052_v21 }
  0x36   :  { %v6098_v45 = vld [vmem:[#allocation2 + $0xb0] sm:$0xff]  ;;  %v6119_v57 = vpack.c.bf16 %v6091_v40, %v6089_v39  ;;  %v6155_v36 = vld [vmem:[#allocation2 + $0xe2] sm:$0xff] }
  0x37   :  { %4705 = vmatpush3.bf16.msra.mxu0 %v5508_v7  ;;  %v6102_v47 = vld [vmem:[#allocation2 + $0x52] sm:$0xff]  ;;  %v257_v2 = vpack.c.bf16 %v6098_v45, %v5640_v1  ;;  %v6130_v7 = vmax.f32 %v153_v62, %v203_v0  ;;  %v5515_v1 = vld [vmem:[%s7031_s1 + $0xa0] sm:$0xff]   ;;  %v5568_v56 = vld [vmem:[%s7033_s3 + $0x48] sm:$0xff]  }
  0x38   :  { %4706 = vmatprep.subr.bf16.mxu0 %v5509_v9  ;;  %v6149_v32 = vld [vmem:[#allocation2 + $0xd2] sm:$0xff]  ;;  %v6169_v52 = vld [vmem:[#allocation2 + $0x100] sm:$0xff] }
  0x39   :  { %236 = vst [vmem:[#allocation2 + $0x121] sm:$0xff] %v6130_v7  ;;  %v6171_v53 = vld [vmem:[#allocation2 + $0x110] sm:$0xff]  ;;  %v5531_v21 = vld [vmem:[%s7031_s1 + $0x120] sm:$0xff]  }
  0x3a   :  { %4691 = vmatmul.mubr.bf16.gmra.mrb[12].mxu0 %v300_v11  ;;  %v6134_v11 = vld [vmem:[#allocation2 + $0xd0] sm:$0xff]  ;;  %v6181_v0 = vpack.c.bf16 %v6171_v53, %v6169_v52  ;;  %v5567_v51 = vld [vmem:[%s7033_s3 + $0x40] sm:$0xff]  }
  0x3b   :  { %4707 = vmatpush3.bf16.msra.mxu0 %v5509_v9  ;;  %4710 = vmatprep.mubr.bf16.mxu0 %v253_v12  ;;  %v6132_v9 = vld [vmem:[#allocation2 + $0xc0] sm:$0xff]  ;;  %v6177_v62 = vld [vmem:[#allocation2 + $0xf2] sm:$0xff] }
  0x3c   :  { %4708 = vmatprep.subr.bf16.mxu0 %v5510_v14  ;;  %v6140_v12 = vld [vmem:[#allocation2 + $0xe0] sm:$0xff]  ;;  %v6153_v33 = vpack.c.bf16 %v6134_v11, %v6132_v9  ;;  %v5541_v17 = vld [vmem:[%s7031_s1 + $0x170] sm:$0xff]   ;;  %4950 = vmatprep.subr.bf16.mxu1 %v5567_v51 }
  0x3d   :  { %v831_v39 = vpack.c.bf16 %v6140_v12, %v6134_v11  ;;  %4951 = vmatpush3.bf16.msra.mxu1 %v5567_v51  ;;  %v1634_v51 = vld [vmem:[#allocation2 + $0x131] sm:$0xff] }
  0x3e   :  { %4952 = vmatprep.subr.bf16.mxu1 %v5568_v56 }
  0x3f   :  { %4709 = vmatpush3.bf16.msra.mxu0 %v5510_v14  ;;  %v6143_v14 = vld [vmem:[#allocation2 + $0xf0] sm:$0xff] }
  0x40   :  { %4726 = vmatprep.subr.bf16.mxu0 %v5511_v19  ;;  %v6159_v37 = vpack.c.bf16 %v6143_v14, %v6140_v12  ;;  %v5534_v12 = vld [vmem:[%s7031_s1 + $0x138] sm:$0xff]  }
  0x41   :  { %4953 = vmatpush3.bf16.msra.mxu1 %v5568_v56  ;;  %v5565_v56 = vld [vmem:[%s7031_s1 + $0x230] sm:$0xff]  }
  0x42   :  { %4711 = vmatmul.mubr.bf16.vlgmr.msra.gmra.mrb[0].mxu0 %v6062_v26 }
  0x43   :  { %4727 = vmatpush3.bf16.msra.mxu0 %v5511_v19  ;;  %4714 = vmatprep.mubr.bf16.mxu0 %v6071_v30  ;;  %v6145_v19 = vld [vmem:[#allocation2 + $0xb2] sm:$0xff] }
  0x44   :  { %4728 = vmatprep.subr.bf16.mxu0 %v5512_v29 }
  0x47   :  { %4729 = vmatpush3.bf16.msra.mxu0 %v5512_v29  ;;  %v6147_v29 = vld [vmem:[#allocation2 + $0xc2] sm:$0xff] }
  0x48   :  { %4730 = vmatprep.subr.bf16.mxu0 %v5513_v44  ;;  %v6227_v13 = vpack.c.bf16 %v6149_v32, %v6147_v29 }
  0x4a   :  { %4715 = vmatmul.mubr.bf16.gmra.mrb[4].mxu0 %v6119_v57 }
  0x4b   :  { %4731 = vmatpush3.bf16.msra.mxu0 %v5513_v44  ;;  %4718 = vmatprep.mubr.bf16.mxu0 %v257_v2  ;;  %v5516_v44 = vld [vmem:[%s7031_s1 + $0xa8] sm:$0xff]  }
  0x4c   :  { %4732 = vmatprep.subr.bf16.mxu0 %v5514_v4  ;;  %v6183_v2 = vld [vmem:[#allocation2 + $0x102] sm:$0xff] }
  0x4f   :  { %4733 = vmatpush3.bf16.msra.mxu0 %v5514_v4  ;;  %v624_v4 = vpack.c.bf16 %v6054_v23, %v608_v55  ;;  %v6201_v55 = vpack.c.bf16 %v6102_v47, %v6064_v27  ;;  %v6359_v23 = vld [vmem:[#allocation2 + $0x82] sm:$0xff] }
  0x50   :  { %4734 = vmatprep.subr.bf16.mxu0 %v5515_v1 }
  0x52   :  { %4719 = vmatmul.mubr.bf16.gmra.mrb[8].mxu0 %v6153_v33 }
  0x53   :  { %4735 = vmatpush3.bf16.msra.mxu0 %v5515_v1  ;;  %4722 = vmatprep.mubr.bf16.mxu0 %v6159_v37  ;;  %v616_v1 = vld [vmem:[#allocation2 + $0xa2] sm:$0xff] }
  0x54   :  { %4736 = vmatprep.subr.bf16.mxu0 %v5516_v44  ;;  %v628_v35 = vpack.c.bf16 %v6145_v19, %v616_v1  ;;  %v6231_v1 = vpack.c.bf16 %v6177_v62, %v6155_v36 }
  0x57   :  { %4737 = vmatpush3.bf16.msra.mxu0 %v5516_v44  ;;  %v6197_v44 = vpack.c.bf16 %v6058_v25, %v6056_v24  ;;  %v5570_v24 = vld [vmem:[%s7033_s3 + $0x58] sm:$0xff]  }
  0x58   :  { %4738 = vmatprep.subr.bf16.mxu0 %v5517_v54 }
  0x5a   :  { %4723 = vmatmul.mubr.bf16.gmra.mrb[12].mxu0 %v6181_v0 }
  0x5b   :  { %4739 = vmatpush3.bf16.msra.mxu0 %v5517_v54  ;;  %4742 = vmatprep.mubr.bf16.mxu0 %v624_v4  ;;  %v5520_v54 = vld [vmem:[%s7031_s1 + $0xc8] sm:$0xff]   ;;  %v6206_v4 = vld [vmem:[#allocation2 + $0x72] sm:$0xff] }
  0x5c   :  { %4740 = vmatprep.subr.bf16.mxu0 %v5518_v43  ;;  %v6215_v3 = vpack.c.bf16 %v6206_v4, %v6121_v61 }
  0x5f   :  { %4741 = vmatpush3.bf16.msra.mxu0 %v5518_v43  ;;  %v5521_v43 = vld [vmem:[%s7031_s1 + $0xd0] sm:$0xff]  }
  0x60   :  { %4758 = vmatprep.subr.bf16.mxu0 %v5519_v38 }
  0x62   :  { %4743 = vmatmul.mubr.bf16.vlgmr.msra.gmra.mrb[0].mxu0 %v6197_v44 }
  0x63   :  { %4759 = vmatpush3.bf16.msra.mxu0 %v5519_v38  ;;  %4746 = vmatprep.mubr.bf16.mxu0 %v6201_v55  ;;  %v5522_v38 = vld [vmem:[%s7031_s1 + $0xd8] sm:$0xff]  }
  0x64   :  { %4760 = vmatprep.subr.bf16.mxu0 %v5520_v54 }
  0x67   :  { %4761 = vmatpush3.bf16.msra.mxu0 %v5520_v54  ;;  %v5524_v54 = vld [vmem:[%s7031_s1 + $0xe8] sm:$0xff]  }
  0x68   :  { %4762 = vmatprep.subr.bf16.mxu0 %v5521_v43 }
  0x6a   :  { %4747 = vmatmul.mubr.bf16.gmra.mrb[4].mxu0 %v6215_v3 }
  0x6b   :  { %4763 = vmatpush3.bf16.msra.mxu0 %v5521_v43  ;;  %4750 = vmatprep.mubr.bf16.mxu0 %v628_v35  ;;  %v6238_v35 = vld [vmem:[#allocation2 + $0x112] sm:$0xff] }
  0x6c   :  { %4764 = vmatprep.subr.bf16.mxu0 %v5522_v38  ;;  %v5525_v43 = vld [vmem:[%s7031_s1 + $0xf0] sm:$0xff]  }
  0x6f   :  { %4765 = vmatpush3.bf16.msra.mxu0 %v5522_v38  ;;  %v6245_v38 = vpack.c.bf16 %v6238_v35, %v6183_v2 }
  0x70   :  { %4766 = vmatprep.subr.bf16.mxu0 %v5523_v34 }
  0x72   :  { %4751 = vmatmul.mubr.bf16.gmra.mrb[8].mxu0 %v6227_v13 }
  0x73   :  { %4767 = vmatpush3.bf16.msra.mxu0 %v5523_v34  ;;  %4754 = vmatprep.mubr.bf16.mxu0 %v6231_v1  ;;  %v5526_v34 = vld [vmem:[%s7031_s1 + $0xf8] sm:$0xff]  }
  0x74   :  { %4768 = vmatprep.subr.bf16.mxu0 %v5524_v54 }
  0x77   :  { %4769 = vmatpush3.bf16.msra.mxu0 %v5524_v54  ;;  %v827_v54 = vpack.c.bf16 %v6050_v20, %v6045_v16  ;;  %v830_v20 = vpack.c.bf16 %v6132_v9, %v6098_v45  ;;  %v5532_v45 = vld [vmem:[%s7031_s1 + $0x128] sm:$0xff]   ;;  %v6285_v9 = vld [vmem:[#allocation2 + $0x120] sm:$0xff] }
  0x78   :  { %4770 = vmatprep.subr.bf16.mxu0 %v5525_v43  ;;  %v833_v11 = vpack.c.bf16 %v6285_v9, %v6171_v53  ;;  %v7041_v53 = vpack.c.bf16 %v6064_v27, %v6058_v25  ;;  %v5546_v25 = vld [vmem:[%s7031_s1 + $0x198] sm:$0xff]   ;;  %v5547_v27 = vld [vmem:[%s7031_s1 + $0x1a0] sm:$0xff]  }
  0x7a   :  { %4755 = vmatmul.mubr.bf16.gmra.mrb[12].mxu0 %v6245_v38 }
  0x7b   :  { %4771 = vmatpush3.bf16.msra.mxu0 %v5525_v43  ;;  %4774 = vmatprep.mubr.bf16.mxu0 %v826_v6  ;;  %v6263_v6 = vld [vmem:[#allocation2 + $0x80] sm:$0xff]  ;;  %v5529_v43 = vld [vmem:[%s7031_s1 + $0x110] sm:$0xff]  }
  0x7c   :  { %4772 = vmatprep.subr.bf16.mxu0 %v5526_v34  ;;  %v829_v16 = vpack.c.bf16 %v6263_v6, %v6091_v40  ;;  %v832_v40 = vpack.c.bf16 %v6169_v52, %v6143_v14  ;;  %v5535_v14 = vld [vmem:[%s7031_s1 + $0x140] sm:$0xff]   ;;  %v5536_v52 = vld [vmem:[%s7031_s1 + $0x148] sm:$0xff]  }
  0x7f   :  { %4773 = vmatpush3.bf16.msra.mxu0 %v5526_v34  ;;  %v5533_v34 = vld [vmem:[%s7031_s1 + $0x130] sm:$0xff]  }
  0x80   :  { %4790 = vmatprep.subr.bf16.mxu0 %v5527_v5 }
  0x82   :  { %4775 = vmatmul.mubr.bf16.vlgmr.msra.gmra.mrb[0].mxu0 %v827_v54  ;;  %v5545_v54 = vld [vmem:[%s7031_s1 + $0x190] sm:$0xff]  }
  0x83   :  { %4791 = vmatpush3.bf16.msra.mxu0 %v5527_v5  ;;  %4778 = vmatprep.mubr.bf16.mxu0 %v828_v10  ;;  %v5530_v5 = vld [vmem:[%s7031_s1 + $0x118] sm:$0xff]   ;;  %v7042_v10 = vpack.c.bf16 %v6121_v61, %v6102_v47  ;;  %v7043_v47 = vpack.c.bf16 %v6147_v29, %v6145_v19  ;;  %v5548_v61 = vld [vmem:[%s7031_s1 + $0x1a8] sm:$0xff]   ;;  %v7045_v19 = vpack.c.bf16 %v6183_v2, %v6177_v62  ;;  %v5553_v62 = vld [vmem:[%s7031_s1 + $0x1d0] sm:$0xff]  }
  0x84   :  { %4792 = vmatprep.subr.bf16.mxu0 %v5528_v15  ;;  %v6415_v2 = vld [vmem:[#allocation2] sm:$0xff] }
  0x87   :  { %4793 = vmatpush3.bf16.msra.mxu0 %v5528_v15  ;;  %v1233_v15 = vpack.c.bf16 %v6359_v23, %v6206_v4  ;;  %v6387_v4 = vld [vmem:[#allocation2 + $0x122] sm:$0xff] }
  0x88   :  { %4794 = vmatprep.subr.bf16.mxu0 %v5529_v43  ;;  %v1237_v29 = vpack.c.bf16 %v6387_v4, %v6238_v35  ;;  %v5554_v35 = vld [vmem:[%s7031_s1 + $0x1d8] sm:$0xff]  }
  0x8a   :  { %4779 = vmatmul.mubr.bf16.gmra.mrb[4].mxu0 %v829_v16  ;;  %v5549_v16 = vld [vmem:[%s7031_s1 + $0x1b0] sm:$0xff]  }
  0x8b   :  { %4795 = vmatpush3.bf16.msra.mxu0 %v5529_v43  ;;  %4782 = vmatprep.mubr.bf16.mxu0 %v830_v20  ;;  %v7044_v43 = vpack.c.bf16 %v6155_v36, %v6149_v32  ;;  %v5550_v20 = vld [vmem:[%s7031_s1 + $0x1b8] sm:$0xff]   ;;  %v5551_v32 = vld [vmem:[%s7031_s1 + $0x1c0] sm:$0xff]   ;;  %v5552_v36 = vld [vmem:[%s7031_s1 + $0x1c8] sm:$0xff]  }
  0x8c   :  { %4796 = vmatprep.subr.bf16.mxu0 %v5530_v5 }
  0x8f   :  { %4797 = vmatpush3.bf16.msra.mxu0 %v5530_v5  ;;  %v1620_v5 = vld [vmem:[#allocation2 + $0x31] sm:$0xff] }
  0x90   :  { %4798 = vmatprep.subr.bf16.mxu0 %v5531_v21 }
  0x92   :  { %4783 = vmatmul.mubr.bf16.gmra.mrb[8].mxu0 %v831_v39 }
  0x93   :  { %4799 = vmatpush3.bf16.msra.mxu0 %v5531_v21  ;;  %4786 = vmatprep.mubr.bf16.mxu0 %v832_v40  ;;  %v1440_v21 = vpack.c.bf16 %v6415_v2, %v6285_v9  ;;  %v1622_v40 = vld [vmem:[#allocation2 + $0x51] sm:$0xff] }
  0x94   :  { %4800 = vmatprep.subr.bf16.mxu0 %v5532_v45 }
  0x97   :  { %4801 = vmatpush3.bf16.msra.mxu0 %v5532_v45  ;;  %v5559_v45 = vld [vmem:[%s7031_s1 + $0x200] sm:$0xff]  }
  0x98   :  { %4802 = vmatprep.subr.bf16.mxu0 %v5533_v34 }
  0x9a   :  { %4787 = vmatmul.mubr.bf16.gmra.mrb[12].mxu0 %v833_v11  ;;  %v1624_v11 = vld [vmem:[#allocation2 + $0x71] sm:$0xff] }
  0x9b   :  { %4803 = vmatpush3.bf16.msra.mxu0 %v5533_v34  ;;  %4806 = vmatprep.mubr.bf16.mxu0 %v1028_v41  ;;  %v1035_v41 = vpack.c.bf16 %v6130_v7, %v6003_v60  ;;  %v5544_v60 = vld [vmem:[%s7031_s1 + $0x188] sm:$0xff]  }
  0x9c   :  { %4804 = vmatprep.subr.bf16.mxu0 %v5534_v12  ;;  %v1623_v34 = vld [vmem:[#allocation2 + $0x61] sm:$0xff] }
  0x9f   :  { %4805 = vmatpush3.bf16.msra.mxu0 %v5534_v12  ;;  %v1637_v12 = vpack.c.bf16 %v1624_v11, %v1623_v34 }
  0xa0   :  { %4822 = vmatprep.subr.bf16.mxu0 %v5535_v14 }
  0xa2   :  { %4807 = vmatmul.mubr.bf16.vlgmr.msra.gmra.mrb[0].mxu0 %v1029_v42  ;;  %v5543_v42 = vld [vmem:[%s7031_s1 + $0x180] sm:$0xff]  }
  0xa3   :  { %4823 = vmatpush3.bf16.msra.mxu0 %v5535_v14  ;;  %4810 = vmatprep.mubr.bf16.mxu0 %v1030_v63  ;;  %v5569_v63 = vld [vmem:[%s7033_s3 + $0x50] sm:$0xff]   ;;  %v5560_v14 = vld [vmem:[%s7031_s1 + $0x208] sm:$0xff]  }
  0xa4   :  { %4824 = vmatprep.subr.bf16.mxu0 %v5536_v52  ;;  %4954 = vmatprep.subr.bf16.mxu1 %v5569_v63 }
  0xa5   :  { %4955 = vmatpush3.bf16.msra.mxu1 %v5569_v63  ;;  %v5566_v63 = vld [vmem:[%s7031_s1 + $0x238] sm:$0xff]  }
  0xa6   :  { %4956 = vmatprep.subr.bf16.mxu1 %v5570_v24 }
  0xa7   :  { %4825 = vmatpush3.bf16.msra.mxu0 %v5536_v52  ;;  %v1626_v52 = vld [vmem:[#allocation2 + $0x91] sm:$0xff] }
  0xa8   :  { %4826 = vmatprep.subr.bf16.mxu0 %v5537_v22 }
  0xa9   :  { %4957 = vmatpush3.bf16.msra.mxu1 %v5570_v24  ;;  %v1828_v24 = vld [vmem:[#allocation2 + $0x92] sm:$0xff] }
  0xaa   :  { %4811 = vmatmul.mubr.bf16.gmra.mrb[4].mxu0 %v1031_v28  ;;  %v1627_v28 = vld [vmem:[#allocation2 + $0xc1] sm:$0xff] }
  0xab   :  { %4827 = vmatpush3.bf16.msra.mxu0 %v5537_v22  ;;  %4814 = vmatprep.mubr.bf16.mxu0 %v7037_v49  ;;  %v5561_v22 = vld [vmem:[%s7031_s1 + $0x210] sm:$0xff]   ;;  %v1638_v49 = vpack.c.bf16 %v1626_v52, %v6100_v46 }
  0xac   :  { %4828 = vmatprep.subr.bf16.mxu0 %v5538_v31 }
  0xaf   :  { %4829 = vmatpush3.bf16.msra.mxu0 %v5538_v31  ;;  %v1628_v31 = vld [vmem:[#allocation2 + $0xd1] sm:$0xff] }
  0xb0   :  { %4830 = vmatprep.subr.bf16.mxu0 %v5539_v50 }
  0xb2   :  { %4815 = vmatmul.mubr.bf16.gmra.mrb[8].mxu0 %v7038_v59  ;;  %v1629_v59 = vld [vmem:[#allocation2 + $0xe1] sm:$0xff] }
  0xb3   :  { %4831 = vmatpush3.bf16.msra.mxu0 %v5539_v50  ;;  %4818 = vmatprep.mubr.bf16.mxu0 %v7039_v8  ;;  %v1639_v50 = vpack.c.bf16 %v1628_v31, %v1627_v28  ;;  %v1630_v8 = vld [vmem:[#allocation2 + $0xf1] sm:$0xff] }
  0xb4   :  { %4832 = vmatprep.subr.bf16.mxu0 %v5540_v58  ;;  %v1640_v46 = vpack.c.bf16 %v1630_v8, %v1629_v59 }
  0xb7   :  { %4833 = vmatpush3.bf16.msra.mxu0 %v5540_v58  ;;  %v5562_v58 = vld [vmem:[%s7031_s1 + $0x218] sm:$0xff]  }
  0xb8   :  { %4834 = vmatprep.subr.bf16.mxu0 %v5541_v17 }
  0xba   :  { %4819 = vmatmul.mubr.bf16.gmra.mrb[12].mxu0 %v1035_v41  ;;  %v1631_v41 = vld [vmem:[#allocation2 + $0x101] sm:$0xff] }
  0xbb   :  { %4835 = vmatpush3.bf16.msra.mxu0 %v5541_v17  ;;  %4838 = vmatprep.mubr.bf16.mxu0 %v7040_v48  ;;  %v5563_v17 = vld [vmem:[%s7031_s1 + $0x220] sm:$0xff]   ;;  %v5564_v48 = vld [vmem:[%s7031_s1 + $0x228] sm:$0xff]  }
  0xbc   :  { %4836 = vmatprep.subr.bf16.mxu0 %v5542_v18 }
  0xbf   :  { %4837 = vmatpush3.bf16.msra.mxu0 %v5542_v18  ;;  %v1632_v18 = vld [vmem:[#allocation2 + $0x111] sm:$0xff] }
  0xc0   :  { %4854 = vmatprep.subr.bf16.mxu0 %v5543_v42 }
  0xc2   :  { %4839 = vmatmul.mubr.bf16.vlgmr.msra.gmra.mrb[0].mxu0 %v7041_v53  ;;  %v1840_v53 = vpack.c.bf16 %v1828_v24, %v6359_v23  ;;  %v5579_v24 = vld [vmem:[%s7033_s3 + $0x20] sm:$0xff]  }
  0xc3   :  { %4855 = vmatpush3.bf16.msra.mxu0 %v5543_v42  ;;  %4842 = vmatprep.mubr.bf16.mxu0 %v7042_v10  ;;  %v1641_v42 = vpack.c.bf16 %v1632_v18, %v1631_v41  ;;  %v5596_v41 = vld [vmem:[%s7033_s3 + $0xe8] sm:$0xff]  }
  0xc4   :  { %4856 = vmatprep.subr.bf16.mxu0 %v5544_v60 }
  0xc7   :  { %4857 = vmatpush3.bf16.msra.mxu0 %v5544_v60  ;;  %v1642_v60 = vpack.c.bf16 %v1634_v51, %v6130_v7  ;;  %v1836_v7 = vld [vmem:[#allocation2 + $0x132] sm:$0xff] }
  0xc8   :  { %4858 = vmatprep.subr.bf16.mxu0 %v5545_v54 }
  0xca   :  { %4843 = vmatmul.mubr.bf16.gmra.mrb[4].mxu0 %v1233_v15 }
  0xcb   :  { %4859 = vmatpush3.bf16.msra.mxu0 %v5545_v54  ;;  %4846 = vmatprep.mubr.bf16.mxu0 %v7043_v47  ;;  %v1844_v54 = vpack.c.bf16 %v1836_v7, %v6387_v4 }
  0xcc   :  { %4860 = vmatprep.subr.bf16.mxu0 %v5546_v25 }
  0xcf   :  { %4861 = vmatpush3.bf16.msra.mxu0 %v5546_v25 }
  0xd0   :  { %4862 = vmatprep.subr.bf16.mxu0 %v5547_v27 }
  0xd2   :  { %4847 = vmatmul.mubr.bf16.gmra.mrb[8].mxu0 %v7044_v43  ;;  %v2119_v43 = vld [vmem:[#allocation3 + $0x1] sm:$0xff] }
  0xd3   :  { %4863 = vmatpush3.bf16.msra.mxu0 %v5547_v27  ;;  %4850 = vmatprep.mubr.bf16.mxu0 %v7045_v19 }
  0xd4   :  { %4864 = vmatprep.subr.bf16.mxu0 %v5548_v61 }
  0xd7   :  { %4865 = vmatpush3.bf16.msra.mxu0 %v5548_v61 }
  0xd8   :  { %4866 = vmatprep.subr.bf16.mxu0 %v5549_v16 }
  0xda   :  { %4851 = vmatmul.mubr.bf16.gmra.mrb[12].mxu0 %v1237_v29 }
  0xdb   :  { %4867 = vmatpush3.bf16.msra.mxu0 %v5549_v16  ;;  %4870 = vmatprep.mubr.bf16.mxu0 %v6062_v26  ;;  %v1436_v26 = vpack.c.bf16 %v6415_v2, %v6263_v6  ;;  %v1619_v6 = vld [vmem:[#allocation2 + $0x21] sm:$0xff] }
  0xdc   :  { %4868 = vmatprep.subr.bf16.mxu0 %v5550_v20  ;;  %v1635_v39 = vpack.c.bf16 %v1620_v5, %v1619_v6 }
  0xdf   :  { %4869 = vmatpush3.bf16.msra.mxu0 %v5550_v20 }
  0xe0   :  { %4886 = vmatprep.subr.bf16.mxu0 %v5551_v32 }
  0xe2   :  { %4871 = vmatmul.mubr.bf16.vlgmr.msra.gmra.mrb[0].mxu0 %v6071_v30  ;;  %v5555_v30 = vld [vmem:[%s7031_s1 + $0x1e0] sm:$0xff]  }
  0xe3   :  { %4887 = vmatpush3.bf16.msra.mxu0 %v5551_v32  ;;  %4874 = vmatprep.mubr.bf16.mxu0 %v6119_v57  ;;  %v5556_v57 = vld [vmem:[%s7031_s1 + $0x1e8] sm:$0xff]  }
  0xe4   :  { %4888 = vmatprep.subr.bf16.mxu0 %v5552_v36 }
  0xe7   :  { %4889 = vmatpush3.bf16.msra.mxu0 %v5552_v36 }
  0xe8   :  { %4890 = vmatprep.subr.bf16.mxu0 %v5553_v62 }
  0xea   :  { %4875 = vmatmul.mubr.bf16.gmra.mrb[4].mxu0 %v1436_v26 }
  0xeb   :  { %4891 = vmatpush3.bf16.msra.mxu0 %v5553_v62  ;;  %4878 = vmatprep.mubr.bf16.mxu0 %v6153_v33  ;;  %v5557_v33 = vld [vmem:[%s7031_s1 + $0x1f0] sm:$0xff]  }
  0xec   :  { %4892 = vmatprep.subr.bf16.mxu0 %v5554_v35 }
  0xef   :  { %4893 = vmatpush3.bf16.msra.mxu0 %v5554_v35  ;;  %v5576_v35 = vld [vmem:[%s7033_s3 + $0x8] sm:$0xff]  }
  0xf0   :  { %4894 = vmatprep.subr.bf16.mxu0 %v5555_v30 }
  0xf2   :  { %4879 = vmatmul.mubr.bf16.gmra.mrb[8].mxu0 %v6159_v37  ;;  %v5558_v37 = vld [vmem:[%s7031_s1 + $0x1f8] sm:$0xff]  }
  0xf3   :  { %4895 = vmatpush3.bf16.msra.mxu0 %v5555_v30  ;;  %4882 = vmatprep.mubr.bf16.mxu0 %v6181_v0  ;;  %v1621_v0 = vld [vmem:[#allocation2 + $0x41] sm:$0xff] }
  0xf4   :  { %4896 = vmatprep.subr.bf16.mxu0 %v5556_v57  ;;  %v1636_v9 = vpack.c.bf16 %v1622_v40, %v1621_v0 }
  0xf7   :  { %4897 = vmatpush3.bf16.msra.mxu0 %v5556_v57 }
  0xf8   :  { %4898 = vmatprep.subr.bf16.mxu0 %v5557_v33 }
  0xfa   :  { %4883 = vmatmul.mubr.bf16.gmra.mrb[12].mxu0 %v1440_v21 }
  0xfb   :  { %4899 = vmatpush3.bf16.msra.mxu0 %v5557_v33  ;;  %4902 = vmatprep.mubr.bf16.mxu0 %v1635_v39 }
  0xfc   :  { %4900 = vmatprep.subr.bf16.mxu0 %v5558_v37 }
  0xff   :  { %4901 = vmatpush3.bf16.msra.mxu0 %v5558_v37 }
 0x100   :  { %4918 = vmatprep.subr.bf16.mxu0 %v5559_v45 }
 0x102   :  { %4903 = vmatmul.mubr.bf16.vlgmr.msra.gmra.mrb[0].mxu0 %v1636_v9 }
 0x103   :  { %4919 = vmatpush3.bf16.msra.mxu0 %v5559_v45  ;;  %4906 = vmatprep.mubr.bf16.mxu0 %v1637_v12  ;;  %v5577_v45 = vld [vmem:[%s7033_s3 + $0x10] sm:$0xff]  }
 0x104   :  { %4920 = vmatprep.subr.bf16.mxu0 %v5560_v14 }
 0x107   :  { %4921 = vmatpush3.bf16.msra.mxu0 %v5560_v14 }
 0x108   :  { %4922 = vmatprep.subr.bf16.mxu0 %v5561_v22 }
 0x10a   :  { %4907 = vmatmul.mubr.bf16.gmra.mrb[4].mxu0 %v1638_v49 }
 0x10b   :  { %4923 = vmatpush3.bf16.msra.mxu0 %v5561_v22  ;;  %4910 = vmatprep.mubr.bf16.mxu0 %v1639_v50  ;;  %v5578_v50 = vld [vmem:[%s7033_s3 + $0x18] sm:$0xff]  }
 0x10c   :  { %4924 = vmatprep.subr.bf16.mxu0 %v5562_v58 }
 0x10f   :  { %4925 = vmatpush3.bf16.msra.mxu0 %v5562_v58 }
 0x110   :  { %4926 = vmatprep.subr.bf16.mxu0 %v5563_v17 }
 0x112   :  { %4911 = vmatmul.mubr.bf16.gmra.mrb[8].mxu0 %v1640_v46 }
 0x113   :  { %4927 = vmatpush3.bf16.msra.mxu0 %v5563_v17  ;;  %4914 = vmatprep.mubr.bf16.mxu0 %v1641_v42 }
 0x114   :  { %4928 = vmatprep.subr.bf16.mxu0 %v5564_v48 }
 0x117   :  { %4929 = vmatpush3.bf16.msra.mxu0 %v5564_v48 }
 0x118   :  { %4930 = vmatprep.subr.bf16.mxu0 %v5565_v56 }
 0x11a   :  { %4915 = vmatmul.mubr.bf16.gmra.mrb[12].mxu0 %v1642_v60 }
 0x11b   :  { %4931 = vmatpush3.bf16.msra.mxu0 %v5565_v56  ;;  %4934 = vmatprep.mubr.bf16.mxu0 %v6197_v44  ;;  %v5571_v44 = vld [vmem:[%s7033_s3 + $0x60] sm:$0xff]  }
 0x11c   :  { %4932 = vmatprep.subr.bf16.mxu0 %v5566_v63  ;;  %4958 = vmatprep.subr.bf16.mxu1 %v5571_v44  ;;  %v2127_v56 = vld [vmem:[#allocation3 + $0xa1] sm:$0xff] }
 0x11d   :  { %4959 = vmatpush3.bf16.msra.mxu1 %v5571_v44 }
 0x11f   :  { %4933 = vmatpush3.bf16.msra.mxu0 %v5566_v63 }
 0x122   :  { %4935 = vmatmul.mubr.bf16.vlgmr.msra.gmra.mrb[0].mxu0 %v6201_v55  ;;  %v5574_v55 = vld [vmem:[%s7033_s3 + $0x78] sm:$0xff]  }
 0x123   :  { %4938 = vmatprep.mubr.bf16.mxu0 %v6215_v3  ;;  %v5572_v3 = vld [vmem:[%s7033_s3 + $0x68] sm:$0xff]  }
 0x124   :  { %4960 = vmatprep.subr.bf16.mxu1 %v5572_v3 }
 0x125   :  { %4961 = vmatpush3.bf16.msra.mxu1 %v5572_v3 }
 0x12a   :  { %4939 = vmatmul.mubr.bf16.gmra.mrb[4].mxu0 %v1840_v53 }
 0x12b   :  { %4942 = vmatprep.mubr.bf16.mxu0 %v6227_v13  ;;  %v5573_v13 = vld [vmem:[%s7033_s3 + $0x70] sm:$0xff]  }
 0x12c   :  { %4962 = vmatprep.subr.bf16.mxu1 %v5573_v13 }
 0x12d   :  { %4963 = vmatpush3.bf16.msra.mxu1 %v5573_v13 }
 0x12e   :  { %4964 = vmatprep.subr.bf16.mxu1 %v5574_v55 }
 0x131   :  { %4965 = vmatpush3.bf16.msra.mxu1 %v5574_v55 }
 0x132   :  { %4943 = vmatmul.mubr.bf16.gmra.mrb[8].mxu0 %v6231_v1  ;;  %v5575_v1 = vld [vmem:[%s7033_s3] sm:$0xff]  }
 0x133   :  { %4946 = vmatprep.mubr.bf16.mxu0 %v6245_v38  ;;  %4982 = vmatprep.subr.bf16.mxu1 %v5575_v1  ;;  %v6491_v38 = vld [vmem:[%s7034_s2] ss:$0 sm:$0xff] }
 0x13a   :  { %4947 = vmatmul.mubr.bf16.gmra.mrb[12].mxu0 %v1844_v54 }
 0x1f5   :  { %v4936_v23 = vpop.f32.mrb[0].mxu0 }
 0x1f6   :  { %v2032_v10 = vadd.f32 %v4936_v23, %v6491_v38  ;;  %v1944_v15 = vpop.f32.mrb[1].mxu0 }
 0x1f7   :  { %v2030_v25 = vadd.f32 %v6491_v38, %v1944_v15  ;;  %v4937_v27 = vpop.f32.mrb[2].mxu0 }
 0x1f8   :  { %v6495_v47 = vmax.f32 %v2032_v10, 0.0  ;;  %v2033_v61 = vadd.f32 %v4937_v27, %v6491_v38  ;;  %v1947_v4 = vpop.f32.mrb[3].mxu0  ;;  %v5594_v27 = vld [vmem:[%s7033_s3 + $0xd8] sm:$0xff]  }
 0x1f9   :  { %v6498_v16 = vmax.f32 %v2030_v25, 0.0  ;;  %v2031_v19 = vadd.f32 %v6491_v38, %v1947_v4  ;;  %v5600_v25 = vld [vmem:[%s7033_s3 + $0x108] sm:$0xff]  }
 0x1fa   :  { %2065 = vst [vmem:[#allocation3 + $0x31] sm:$0xff] %v6495_v47  ;;  %v6502_v29 = vmax.f32 %v2033_v61, 0.0 }
 0x1fb   :  { %2063 = vst [vmem:[#allocation3 + $0x11] sm:$0xff] %v6498_v16  ;;  %v6505_v20 = vmax.f32 %v2031_v19, 0.0  ;;  %v2135_v32 = vpack.c.bf16 %v6498_v16, %v2119_v43 }
 0x1fc   :  { %2066 = vst [vmem:[#allocation3 + $0x41] sm:$0xff] %v6502_v29  ;;  %v2871_v36 = vpack.c.bf16 %v6502_v29, %v6495_v47 }
 0x1fd   :  { %2064 = vst [vmem:[#allocation3 + $0x21] sm:$0xff] %v6505_v20  ;;  %v4940_v62 = vpop.f32.mrb[4].mxu0  ;;  %4966 = vmatprep.mubr.bf16.mxu1 %v2135_v32  ;;  %v2136_v26 = vpack.c.bf16 %v6495_v47, %v6505_v20  ;;  %v2870_v30 = vpack.c.bf16 %v6505_v20, %v6498_v16  ;;  %v5609_v16 = vld [vmem:[%s7033_s3 + $0x150] sm:$0xff]   ;;  %v5610_v20 = vld [vmem:[%s7033_s3 + $0x158] sm:$0xff]  }
 0x1fe   :  { %v2036_v57 = vadd.f32 %v4940_v62, %v6491_v38  ;;  %v1960_v33 = vpop.f32.mrb[5].mxu0 }
 0x1ff   :  { %v2034_v6 = vadd.f32 %v6491_v38, %v1960_v33  ;;  %v4941_v5 = vpop.f32.mrb[6].mxu0  ;;  %4967 = vmatmul.mubr.bf16.vlgmr.msra.gmra.mrb[0].mxu1 %v2136_v26 }
 0x200   :  { %v2052_v21 = vmax.f32 %v2036_v57, 0.0  ;;  %v2037_v39 = vadd.f32 %v4941_v5, %v6491_v38  ;;  %v1963_v37 = vpop.f32.mrb[7].mxu0  ;;  %4983 = vmatpush3.bf16.msra.mxu1 %v5575_v1  ;;  %v5580_v1 = vld [vmem:[%s7033_s3 + $0x28] sm:$0xff]  }
 0x201   :  { %v6522_v0 = vmax.f32 %v2034_v6, 0.0  ;;  %v2035_v40 = vadd.f32 %v6491_v38, %v1963_v37  ;;  %4984 = vmatprep.subr.bf16.mxu1 %v5576_v35  ;;  %v6533_v12 = vld [vmem:[#allocation3 + $0x32] sm:$0xff] }
 0x202   :  { %2069 = vst [vmem:[#allocation3 + $0x71] sm:$0xff] %v2052_v21  ;;  %v2053_v34 = vmax.f32 %v2037_v39, 0.0  ;;  %v6548_v58 = vld [vmem:[#allocation3 + $0x12] sm:$0xff] }
 0x203   :  { %2067 = vst [vmem:[#allocation3 + $0x51] sm:$0xff] %v6522_v0  ;;  %v6529_v11 = vmax.f32 %v2035_v40, 0.0  ;;  %v2137_v9 = vpack.c.bf16 %v6522_v0, %v6502_v29  ;;  %v6535_v14 = vld [vmem:[#allocation3 + $0x42] sm:$0xff]  ;;  %v6603_v5 = vld [vmem:[#allocation3 + $0x10] sm:$0xff] }
 0x204   :  { %2070 = vst [vmem:[#allocation3 + $0x81] sm:$0xff] %v2053_v34  ;;  %4985 = vmatpush3.bf16.msra.mxu1 %v5576_v35  ;;  %v6537_v52 = vld [vmem:[#allocation3 + $0x22] sm:$0xff]  ;;  %v6539_v22 = vpack.c.bf16 %v2053_v34, %v2052_v21  ;;  %v5581_v35 = vld [vmem:[%s7033_s3 + $0x30] sm:$0xff]   ;;  %v5582_v34 = vld [vmem:[%s7033_s3 + $0x38] sm:$0xff]  }
 0x205   :  { %2068 = vst [vmem:[#allocation3 + $0x61] sm:$0xff] %v6529_v11  ;;  %v4944_v31 = vpop.f32.mrb[8].mxu0  ;;  %4970 = vmatprep.mubr.bf16.mxu1 %v2137_v9  ;;  %v2138_v49 = vpack.c.bf16 %v2052_v21, %v6529_v11  ;;  %4986 = vmatprep.subr.bf16.mxu1 %v5577_v45  ;;  %v2872_v17 = vpack.c.bf16 %v6529_v11, %v6522_v0  ;;  %v5592_v40 = vld [vmem:[%s7033_s3 + $0xc8] sm:$0xff]   ;;  %v5611_v29 = vld [vmem:[%s7033_s3 + $0x160] sm:$0xff]   ;;  %v5613_v11 = vld [vmem:[%s7033_s3 + $0x170] sm:$0xff]  }
 0x206   :  { %v2040_v59 = vadd.f32 %v4944_v31, %v6491_v38  ;;  %v1976_v8 = vpop.f32.mrb[9].mxu0  ;;  %v2095_v31 = vpack.c.bf16 %v6603_v5, %v6415_v2 }
 0x207   :  { %v2038_v18 = vadd.f32 %v6491_v38, %v1976_v8  ;;  %v4945_v46 = vpop.f32.mrb[10].mxu0  ;;  %4971 = vmatmul.mubr.bf16.gmra.mrb[4].mxu1 %v2138_v49  ;;  %v6631_v8 = vld [vmem:[#allocation3 + $0x20] sm:$0xff]  ;;  %v5598_v49 = vld [vmem:[%s7033_s3 + $0xf8] sm:$0xff]  }
 0x208   :  { %v6556_v42 = vmax.f32 %v2040_v59, 0.0  ;;  %v2041_v48 = vadd.f32 %v4945_v46, %v6491_v38  ;;  %v1979_v51 = vpop.f32.mrb[11].mxu0  ;;  %4987 = vmatpush3.bf16.msra.mxu1 %v5577_v45  ;;  %v5583_v59 = vld [vmem:[%s7033_s3 + $0x80] sm:$0xff]   ;;  %v6635_v46 = vld [vmem:[#allocation3 + $0x30] sm:$0xff] }
 0x209   :  { %v6559_v60 = vmax.f32 %v2038_v18, 0.0  ;;  %v2039_v63 = vadd.f32 %v6491_v38, %v1979_v51  ;;  %4988 = vmatprep.subr.bf16.mxu1 %v5578_v50 }
 0x20a   :  { %2073 = vst [vmem:[#allocation3 + $0xd1] sm:$0xff] %v6556_v42  ;;  %v6566_v53 = vmax.f32 %v2041_v48, 0.0  ;;  %v6583_v23 = vld [vmem:[#allocation3 + $0x52] sm:$0xff] }
 0x20b   :  { %2071 = vst [vmem:[#allocation3 + $0xb1] sm:$0xff] %v6559_v60  ;;  %v6569_v7 = vmax.f32 %v2039_v63, 0.0  ;;  %v2139_v54 = vpack.c.bf16 %v6559_v60, %v2127_v56  ;;  %v6633_v18 = vld [vmem:[#allocation3 + $0x50] sm:$0xff]  ;;  %v6643_v56 = vpack.c.bf16 %v6635_v46, %v6631_v8  ;;  %v6645_v63 = vld [vmem:[#allocation3 + $0x40] sm:$0xff] }
 0x20c   :  { %2074 = vst [vmem:[#allocation3 + $0xe1] sm:$0xff] %v6566_v53  ;;  %4989 = vmatpush3.bf16.msra.mxu1 %v5578_v50  ;;  %v6573_v44 = vld [vmem:[#allocation3 + $0x62] sm:$0xff]  ;;  %v2669_v3 = vpack.c.bf16 %v6645_v63, %v6635_v46 }
 0x20d   :  { %2072 = vst [vmem:[#allocation3 + $0xc1] sm:$0xff] %v6569_v7  ;;  %v4948_v13 = vpop.f32.mrb[12].mxu0  ;;  %4974 = vmatprep.mubr.bf16.mxu1 %v2139_v54  ;;  %v2140_v55 = vpack.c.bf16 %v6556_v42, %v6569_v7  ;;  %4990 = vmatprep.subr.bf16.mxu1 %v5579_v24  ;;  %v6722_v54 = vpack.c.bf16 %v6533_v12, %v6537_v52 }
 0x20e   :  { %v2044_v10 = vadd.f32 %v4948_v13, %v6491_v38  ;;  %v1992_v15 = vpop.f32.mrb[13].mxu0  ;;  %v6654_v13 = vpack.c.bf16 %v6633_v18, %v6645_v63  ;;  %v5602_v63 = vld [vmem:[%s7033_s3 + $0x118] sm:$0xff]   ;;  %v7046_v47 = vpack.c.bf16 %v6569_v7, %v6559_v60  ;;  %v5616_v60 = vld [vmem:[%s7033_s3 + $0x188] sm:$0xff]   ;;  %v7051_v7 = vpack.c.bf16 %v6573_v44, %v6583_v23 }
 0x20f   :  { %v2042_v61 = vadd.f32 %v6491_v38, %v1992_v15  ;;  %v4949_v4 = vpop.f32.mrb[14].mxu0  ;;  %4975 = vmatmul.mubr.bf16.gmra.mrb[8].mxu1 %v2140_v55  ;;  %v5585_v55 = vld [vmem:[%s7033_s3 + $0x90] sm:$0xff]  }
 0x210   :  { %v2060_v43 = vmax.f32 %v2044_v10, 0.0  ;;  %v2045_v19 = vadd.f32 %v4949_v4, %v6491_v38  ;;  %v1995_v32 = vpop.f32.mrb[15].mxu0  ;;  %4991 = vmatpush3.bf16.msra.mxu1 %v5579_v24  ;;  %v5584_v24 = vld [vmem:[%s7033_s3 + $0x88] sm:$0xff]   ;;  %v6665_v15 = vld [vmem:[#allocation3 + $0x70] sm:$0xff]  ;;  %v5586_v4 = vld [vmem:[%s7033_s3 + $0x98] sm:$0xff]  }
 0x211   :  { %v6592_v62 = vmax.f32 %v2042_v61, 0.0  ;;  %v2043_v26 = vadd.f32 %v6491_v38, %v1995_v32  ;;  %4992 = vmatprep.subr.bf16.mxu1 %v5580_v1  ;;  %v6605_v21 = vld [vmem:[#allocation3 + $0xd2] sm:$0xff] }
 0x212   :  { %2077 = vst [vmem:[#allocation3 + $0x111] sm:$0xff] %v2060_v43  ;;  %v2061_v57 = vmax.f32 %v2045_v19, 0.0  ;;  %v6620_v9 = vld [vmem:[#allocation3 + $0xb2] sm:$0xff]  ;;  %v5587_v19 = vld [vmem:[%s7033_s3 + $0xa0] sm:$0xff]  }
 0x213   :  { %2075 = vst [vmem:[#allocation3 + $0xf1] sm:$0xff] %v6592_v62  ;;  %v6599_v33 = vmax.f32 %v2043_v26, 0.0  ;;  %v2141_v6 = vpack.c.bf16 %v6592_v62, %v6566_v53  ;;  %v6607_v39 = vld [vmem:[#allocation3 + $0xe2] sm:$0xff]  ;;  %v6663_v10 = vld [vmem:[#allocation3 + $0xb0] sm:$0xff] }
 0x214   :  { %2078 = vst [vmem:[#allocation3 + $0x121] sm:$0xff] %v2061_v57  ;;  %4993 = vmatpush3.bf16.msra.mxu1 %v5580_v1  ;;  %v6609_v38 = vld [vmem:[#allocation3 + $0xc2] sm:$0xff]  ;;  %v6611_v37 = vpack.c.bf16 %v2061_v57, %v2060_v43 }
 0x215   :  { %2076 = vst [vmem:[#allocation3 + $0x101] sm:$0xff] %v6599_v33  ;;  %4978 = vmatprep.mubr.bf16.mxu1 %v2141_v6  ;;  %v2142_v45 = vpack.c.bf16 %v2060_v43, %v6599_v33  ;;  %4994 = vmatprep.subr.bf16.mxu1 %v5581_v35  ;;  %v6661_v1 = vld [vmem:[#allocation3 + $0x60] sm:$0xff]  ;;  %v2099_v43 = vpack.c.bf16 %v6663_v10, %v6415_v2 }
 0x216   :  { %v6669_v61 = vpack.c.bf16 %v6665_v15, %v6661_v1  ;;  %v6680_v32 = vld [vmem:[#allocation3 + $0xc0] sm:$0xff]  ;;  %v6752_v28 = vpack.c.bf16 %v6605_v21, %v6609_v38  ;;  %v7048_v0 = vpack.c.bf16 %v6599_v33, %v6592_v62  ;;  %v7053_v33 = vpack.c.bf16 %v6607_v39, %v6605_v21  ;;  %v5622_v21 = vld [vmem:[%s7033_s3 + $0x1b8] sm:$0xff]  }
 0x217   :  { %4979 = vmatmul.mubr.bf16.gmra.mrb[12].mxu1 %v2142_v45  ;;  %v6690_v6 = vld [vmem:[#allocation3 + $0xe0] sm:$0xff]  ;;  %v5588_v45 = vld [vmem:[%s7033_s3 + $0xa8] sm:$0xff]  }
 0x218   :  { %4995 = vmatpush3.bf16.msra.mxu1 %v5581_v35  ;;  %4998 = vmatprep.mubr.bf16.mxu1 %v2095_v31  ;;  %v6684_v35 = vld [vmem:[#allocation3 + $0xd0] sm:$0xff] }
 0x219   :  { %4996 = vmatprep.subr.bf16.mxu1 %v5582_v34  ;;  %v6688_v57 = vpack.c.bf16 %v6684_v35, %v6680_v32  ;;  %v5589_v31 = vld [vmem:[%s7033_s3 + $0xb0] sm:$0xff]  }
 0x21a   :  { %v6637_v48 = vld [vmem:[#allocation3 + $0xf2] sm:$0xff] }
 0x21b   :  { %v6682_v26 = vld [vmem:[#allocation3 + $0xf0] sm:$0xff] }
 0x21c   :  { %4997 = vmatpush3.bf16.msra.mxu1 %v5582_v34  ;;  %v6639_v51 = vld [vmem:[#allocation3 + $0x102] sm:$0xff]  ;;  %v6697_v34 = vpack.c.bf16 %v6682_v26, %v6690_v6 }
 0x21d   :  { %5014 = vmatprep.subr.bf16.mxu1 %v5583_v59 }
 0x21f   :  { %4999 = vmatmul.mubr.bf16.vlgmr.msra.gmra.mrb[0].mxu1 %v6643_v56 }
 0x220   :  { %5002 = vmatprep.mubr.bf16.mxu1 %v6654_v13  ;;  %5015 = vmatpush3.bf16.msra.mxu1 %v5583_v59  ;;  %v6704_v59 = vld [vmem:[#allocation3 + $0x100] sm:$0xff] }
 0x221   :  { %5016 = vmatprep.subr.bf16.mxu1 %v5584_v24 }
 0x224   :  { %5017 = vmatpush3.bf16.msra.mxu1 %v5584_v24  ;;  %v2450_v24 = vld [vmem:[#allocation3 + $0x2] sm:$0xff] }
 0x225   :  { %5018 = vmatprep.subr.bf16.mxu1 %v5585_v55 }
 0x227   :  { %5003 = vmatmul.mubr.bf16.gmra.mrb[4].mxu1 %v6669_v61 }
 0x228   :  { %5006 = vmatprep.mubr.bf16.mxu1 %v2099_v43  ;;  %5019 = vmatpush3.bf16.msra.mxu1 %v5585_v55  ;;  %v6706_v55 = vld [vmem:[#allocation3 + $0x110] sm:$0xff]  ;;  %v5590_v43 = vld [vmem:[%s7033_s3 + $0xb8] sm:$0xff]  }
 0x229   :  { %5020 = vmatprep.subr.bf16.mxu1 %v5586_v4 }
 0x22c   :  { %5021 = vmatpush3.bf16.msra.mxu1 %v5586_v4  ;;  %v6710_v4 = vpack.c.bf16 %v6706_v55, %v6704_v59 }
 0x22d   :  { %5022 = vmatprep.subr.bf16.mxu1 %v5587_v19 }
 0x22f   :  { %5007 = vmatmul.mubr.bf16.gmra.mrb[8].mxu1 %v6688_v57 }
 0x230   :  { %5010 = vmatprep.mubr.bf16.mxu1 %v6697_v34  ;;  %5023 = vmatpush3.bf16.msra.mxu1 %v5587_v19  ;;  %v2466_v19 = vpack.c.bf16 %v6548_v58, %v2450_v24  ;;  %v6729_v24 = vpack.c.bf16 %v6583_v23, %v6535_v14  ;;  %v5620_v23 = vld [vmem:[%s7033_s3 + $0x1a8] sm:$0xff]  }
 0x231   :  { %5024 = vmatprep.subr.bf16.mxu1 %v5588_v45 }
 0x234   :  { %5025 = vmatpush3.bf16.msra.mxu1 %v5588_v45  ;;  %v5591_v45 = vld [vmem:[%s7033_s3 + $0xc0] sm:$0xff]  }
 0x235   :  { %5026 = vmatprep.subr.bf16.mxu1 %v5589_v31 }
 0x237   :  { %5011 = vmatmul.mubr.bf16.gmra.mrb[12].mxu1 %v6710_v4 }
 0x238   :  { %5027 = vmatpush3.bf16.msra.mxu1 %v5589_v31  ;;  %5030 = vmatprep.mubr.bf16.mxu1 %v2466_v19  ;;  %v5593_v31 = vld [vmem:[%s7033_s3 + $0xd0] sm:$0xff]  }
 0x239   :  { %5028 = vmatprep.subr.bf16.mxu1 %v5590_v43  ;;  %v6736_v19 = vld [vmem:[#allocation3 + $0x72] sm:$0xff] }
 0x23a   :  { %v6740_v50 = vpack.c.bf16 %v6736_v19, %v6573_v44  ;;  %v5619_v44 = vld [vmem:[%s7033_s3 + $0x1a0] sm:$0xff]  }
 0x23c   :  { %5029 = vmatpush3.bf16.msra.mxu1 %v5590_v43  ;;  %v2458_v43 = vld [vmem:[#allocation3 + $0xa2] sm:$0xff] }
 0x23d   :  { %5046 = vmatprep.subr.bf16.mxu1 %v5591_v45 }
 0x23f   :  { %5031 = vmatmul.mubr.bf16.vlgmr.msra.gmra.mrb[0].mxu1 %v6722_v54 }
 0x240   :  { %5034 = vmatprep.mubr.bf16.mxu1 %v6729_v24  ;;  %5047 = vmatpush3.bf16.msra.mxu1 %v5591_v45  ;;  %v2470_v45 = vpack.c.bf16 %v6620_v9, %v2458_v43  ;;  %v6759_v43 = vpack.c.bf16 %v6637_v48, %v6607_v39  ;;  %v5623_v39 = vld [vmem:[%s7033_s3 + $0x1c0] sm:$0xff]  }
 0x241   :  { %5048 = vmatprep.subr.bf16.mxu1 %v5592_v40 }
 0x244   :  { %5049 = vmatpush3.bf16.msra.mxu1 %v5592_v40  ;;  %v5595_v40 = vld [vmem:[%s7033_s3 + $0xe0] sm:$0xff]  }
 0x245   :  { %5050 = vmatprep.subr.bf16.mxu1 %v5593_v31 }
 0x247   :  { %5035 = vmatmul.mubr.bf16.gmra.mrb[4].mxu1 %v6740_v50 }
 0x248   :  { %5038 = vmatprep.mubr.bf16.mxu1 %v2470_v45  ;;  %5051 = vmatpush3.bf16.msra.mxu1 %v5593_v31  ;;  %v6766_v31 = vld [vmem:[#allocation3 + $0x112] sm:$0xff] }
 0x249   :  { %5052 = vmatprep.subr.bf16.mxu1 %v5594_v27  ;;  %v6770_v45 = vpack.c.bf16 %v6766_v31, %v6639_v51 }
 0x24c   :  { %5053 = vmatpush3.bf16.msra.mxu1 %v5594_v27  ;;  %v5597_v27 = vld [vmem:[%s7033_s3 + $0xf0] sm:$0xff]  }
 0x24d   :  { %5054 = vmatprep.subr.bf16.mxu1 %v5595_v40 }
 0x24f   :  { %5039 = vmatmul.mubr.bf16.gmra.mrb[8].mxu1 %v6752_v28 }
 0x250   :  { %5042 = vmatprep.mubr.bf16.mxu1 %v6759_v43  ;;  %5055 = vmatpush3.bf16.msra.mxu1 %v5595_v40  ;;  %v2668_v40 = vpack.c.bf16 %v6631_v8, %v6603_v5  ;;  %v2670_v5 = vpack.c.bf16 %v6661_v1, %v6633_v18  ;;  %v5601_v8 = vld [vmem:[%s7033_s3 + $0x110] sm:$0xff]   ;;  %v5603_v18 = vld [vmem:[%s7033_s3 + $0x120] sm:$0xff]   ;;  %v5604_v1 = vld [vmem:[%s7033_s3 + $0x128] sm:$0xff]  }
 0x251   :  { %5056 = vmatprep.subr.bf16.mxu1 %v5596_v41 }
 0x254   :  { %5057 = vmatpush3.bf16.msra.mxu1 %v5596_v41  ;;  %v5599_v41 = vld [vmem:[%s7033_s3 + $0x100] sm:$0xff]  }
 0x255   :  { %5058 = vmatprep.subr.bf16.mxu1 %v5597_v27 }
 0x257   :  { %5043 = vmatmul.mubr.bf16.gmra.mrb[12].mxu1 %v6770_v45 }
 0x258   :  { %5059 = vmatpush3.bf16.msra.mxu1 %v5597_v27  ;;  %5062 = vmatprep.mubr.bf16.mxu1 %v2668_v40  ;;  %v3461_v27 = vld [vmem:[#allocation3 + $0x21] sm:$0xff]  ;;  %v3462_v40 = vld [vmem:[#allocation3 + $0x31] sm:$0xff] }
 0x259   :  { %5060 = vmatprep.subr.bf16.mxu1 %v5598_v49 }
 0x25c   :  { %5061 = vmatpush3.bf16.msra.mxu1 %v5598_v49  ;;  %v6791_v49 = vld [vmem:[#allocation3 + $0x80] sm:$0xff] }
 0x25d   :  { %5078 = vmatprep.subr.bf16.mxu1 %v5599_v41  ;;  %v2671_v46 = vpack.c.bf16 %v6791_v49, %v6665_v15  ;;  %v5605_v15 = vld [vmem:[%s7033_s3 + $0x130] sm:$0xff]  }
 0x25f   :  { %5063 = vmatmul.mubr.bf16.vlgmr.msra.gmra.mrb[0].mxu1 %v2669_v3  ;;  %v2672_v3 = vpack.c.bf16 %v6680_v32, %v6663_v10  ;;  %v2674_v10 = vpack.c.bf16 %v6704_v59, %v6682_v26  ;;  %v6813_v32 = vld [vmem:[#allocation3 + $0x120] sm:$0xff]  ;;  %v5608_v59 = vld [vmem:[%s7033_s3 + $0x148] sm:$0xff]  }
 0x260   :  { %5066 = vmatprep.mubr.bf16.mxu1 %v2670_v5  ;;  %5079 = vmatpush3.bf16.msra.mxu1 %v5599_v41  ;;  %v5607_v26 = vld [vmem:[%s7033_s3 + $0x140] sm:$0xff]   ;;  %v5630_v41 = vld [vmem:[%s7033_s3 + $0x1f8] sm:$0xff]  }
 0x261   :  { %5080 = vmatprep.subr.bf16.mxu1 %v5600_v25  ;;  %v3464_v5 = vld [vmem:[#allocation3 + $0x51] sm:$0xff] }
 0x264   :  { %5081 = vmatpush3.bf16.msra.mxu1 %v5600_v25  ;;  %v2673_v25 = vpack.c.bf16 %v6690_v6, %v6684_v35  ;;  %v2675_v35 = vpack.c.bf16 %v6813_v32, %v6706_v55  ;;  %v5606_v6 = vld [vmem:[%s7033_s3 + $0x138] sm:$0xff]  }
 0x265   :  { %5082 = vmatprep.subr.bf16.mxu1 %v5601_v8 }
 0x267   :  { %5067 = vmatmul.mubr.bf16.gmra.mrb[4].mxu1 %v2671_v46  ;;  %v3466_v46 = vld [vmem:[#allocation3 + $0x71] sm:$0xff] }
 0x268   :  { %5070 = vmatprep.mubr.bf16.mxu1 %v2672_v3  ;;  %5083 = vmatpush3.bf16.msra.mxu1 %v5601_v8  ;;  %v3465_v8 = vld [vmem:[#allocation3 + $0x61] sm:$0xff] }
 0x269   :  { %5084 = vmatprep.subr.bf16.mxu1 %v5602_v63  ;;  %v3479_v3 = vpack.c.bf16 %v3466_v46, %v3465_v8 }
 0x26c   :  { %5085 = vmatpush3.bf16.msra.mxu1 %v5602_v63  ;;  %v5632_v63 = vld [vmem:[%s7033_s3 + $0x208] sm:$0xff]  }
 0x26d   :  { %5086 = vmatprep.subr.bf16.mxu1 %v5603_v18 }
 0x26f   :  { %5071 = vmatmul.mubr.bf16.gmra.mrb[8].mxu1 %v2673_v25  ;;  %v3467_v25 = vld [vmem:[#allocation3 + $0x81] sm:$0xff] }
 0x270   :  { %5074 = vmatprep.mubr.bf16.mxu1 %v2674_v10  ;;  %5087 = vmatpush3.bf16.msra.mxu1 %v5603_v18  ;;  %v5633_v18 = vld [vmem:[%s7033_s3 + $0x210] sm:$0xff]   ;;  %v3469_v10 = vld [vmem:[#allocation3 + $0xc1] sm:$0xff] }
 0x271   :  { %5088 = vmatprep.subr.bf16.mxu1 %v5604_v1 }
 0x274   :  { %5089 = vmatpush3.bf16.msra.mxu1 %v5604_v1  ;;  %v3468_v1 = vld [vmem:[#allocation3 + $0x91] sm:$0xff] }
 0x275   :  { %5090 = vmatprep.subr.bf16.mxu1 %v5605_v15 }
 0x277   :  { %5075 = vmatmul.mubr.bf16.gmra.mrb[12].mxu1 %v2675_v35  ;;  %v5634_v35 = vld [vmem:[%s7033_s3 + $0x218] sm:$0xff]  }
 0x278   :  { %5091 = vmatpush3.bf16.msra.mxu1 %v5605_v15  ;;  %5094 = vmatprep.mubr.bf16.mxu1 %v2870_v30  ;;  %v7047_v30 = vpack.c.bf16 %v6566_v53, %v6556_v42  ;;  %v5615_v42 = vld [vmem:[%s7033_s3 + $0x180] sm:$0xff]   ;;  %v7050_v53 = vpack.c.bf16 %v6535_v14, %v6533_v12  ;;  %v5618_v12 = vld [vmem:[%s7033_s3 + $0x198] sm:$0xff]   ;;  %v7052_v14 = vpack.c.bf16 %v6609_v38, %v6620_v9 }
 0x279   :  { %5092 = vmatprep.subr.bf16.mxu1 %v5606_v6  ;;  %v7054_v38 = vpack.c.bf16 %v6639_v51, %v6637_v48  ;;  %v6907_v9 = vld [vmem:[#allocation3 + $0x122] sm:$0xff]  ;;  %v5625_v51 = vld [vmem:[%s7033_s3 + $0x1d0] sm:$0xff]   ;;  %v3480_v15 = vpack.c.bf16 %v3468_v1, %v3467_v25 }
 0x27a   :  { %v3079_v55 = vpack.c.bf16 %v6907_v9, %v6766_v31  ;;  %v5624_v48 = vld [vmem:[%s7033_s3 + $0x1c8] sm:$0xff]   ;;  %v3282_v31 = vpack.c.bf16 %v6415_v2, %v6813_v32  ;;  %v3470_v32 = vld [vmem:[#allocation3 + $0xd1] sm:$0xff] }
 0x27c   :  { %5093 = vmatpush3.bf16.msra.mxu1 %v5606_v6  ;;  %v3481_v6 = vpack.c.bf16 %v3470_v32, %v3469_v10 }
 0x27d   :  { %5110 = vmatprep.subr.bf16.mxu1 %v5607_v26 }
 0x27f   :  { %5095 = vmatmul.mubr.bf16.vlgmr.msra.gmra.mrb[0].mxu1 %v2871_v36  ;;  %v5612_v36 = vld [vmem:[%s7033_s3 + $0x168] sm:$0xff]  }
 0x280   :  { %5098 = vmatprep.mubr.bf16.mxu1 %v2872_v17  ;;  %5111 = vmatpush3.bf16.msra.mxu1 %v5607_v26  ;;  %v7049_v17 = vpack.c.bf16 %v6537_v52, %v6548_v58  ;;  %v5617_v52 = vld [vmem:[%s7033_s3 + $0x190] sm:$0xff]   ;;  %v6882_v58 = vld [vmem:[#allocation3 + $0x82] sm:$0xff] }
 0x281   :  { %5112 = vmatprep.subr.bf16.mxu1 %v5608_v59  ;;  %v3075_v62 = vpack.c.bf16 %v6882_v58, %v6736_v19  ;;  %v5626_v19 = vld [vmem:[%s7033_s3 + $0x1d8] sm:$0xff]   ;;  %v5635_v26 = vld [vmem:[%s7033_s3 + $0x220] sm:$0xff]  }
 0x284   :  { %5113 = vmatpush3.bf16.msra.mxu1 %v5608_v59  ;;  %v3472_v59 = vld [vmem:[#allocation3 + $0xf1] sm:$0xff] }
 0x285   :  { %5114 = vmatprep.subr.bf16.mxu1 %v5609_v16 }
 0x287   :  { %5099 = vmatmul.mubr.bf16.gmra.mrb[4].mxu1 %v6539_v22  ;;  %v5614_v22 = vld [vmem:[%s7033_s3 + $0x178] sm:$0xff]  }
 0x288   :  { %5102 = vmatprep.mubr.bf16.mxu1 %v7046_v47  ;;  %5115 = vmatpush3.bf16.msra.mxu1 %v5609_v16  ;;  %v3473_v16 = vld [vmem:[#allocation3 + $0x101] sm:$0xff] }
 0x289   :  { %5116 = vmatprep.subr.bf16.mxu1 %v5610_v20 }
 0x28c   :  { %5117 = vmatpush3.bf16.msra.mxu1 %v5610_v20  ;;  %v3471_v20 = vld [vmem:[#allocation3 + $0xe1] sm:$0xff] }
 0x28d   :  { %5118 = vmatprep.subr.bf16.mxu1 %v5611_v29  ;;  %v3482_v47 = vpack.c.bf16 %v3472_v59, %v3471_v20 }
 0x28f   :  { %5103 = vmatmul.mubr.bf16.gmra.mrb[8].mxu1 %v7047_v30 }
 0x290   :  { %5106 = vmatprep.mubr.bf16.mxu1 %v7048_v0  ;;  %5119 = vmatpush3.bf16.msra.mxu1 %v5611_v29  ;;  %v3474_v29 = vld [vmem:[#allocation3 + $0x111] sm:$0xff] }
 0x291   :  { %5120 = vmatprep.subr.bf16.mxu1 %v5612_v36  ;;  %v3483_v30 = vpack.c.bf16 %v3474_v29, %v3473_v16  ;;  %v5637_v0 = vld [vmem:[%s7033_s3 + $0x230] sm:$0xff]  }
 0x294   :  { %5121 = vmatpush3.bf16.msra.mxu1 %v5612_v36  ;;  %v5636_v36 = vld [vmem:[%s7033_s3 + $0x228] sm:$0xff]  }
 0x295   :  { %5122 = vmatprep.subr.bf16.mxu1 %v5613_v11 }
 0x297   :  { %5107 = vmatmul.mubr.bf16.gmra.mrb[12].mxu1 %v6611_v37  ;;  %v5621_v37 = vld [vmem:[%s7033_s3 + $0x1b0] sm:$0xff]  }
 0x298   :  { %5123 = vmatpush3.bf16.msra.mxu1 %v5613_v11  ;;  %5126 = vmatprep.mubr.bf16.mxu1 %v7049_v17  ;;  %v3475_v11 = vld [vmem:[#allocation3 + $0x121] sm:$0xff] }
 0x299   :  { %5124 = vmatprep.subr.bf16.mxu1 %v5614_v22 }
 0x29c   :  { %5125 = vmatpush3.bf16.msra.mxu1 %v5614_v22  ;;  %v3476_v22 = vld [vmem:[#allocation3 + $0x131] sm:$0xff] }
 0x29d   :  { %5142 = vmatprep.subr.bf16.mxu1 %v5615_v42  ;;  %v3484_v17 = vpack.c.bf16 %v3476_v22, %v3475_v11 }
 0x29f   :  { %5127 = vmatmul.mubr.bf16.vlgmr.msra.gmra.mrb[0].mxu1 %v7050_v53 }
 0x2a0   :  { %5130 = vmatprep.mubr.bf16.mxu1 %v7051_v7  ;;  %5143 = vmatpush3.bf16.msra.mxu1 %v5615_v42  ;;  %v5638_v42 = vld [vmem:[%s7033_s3 + $0x238] sm:$0xff]  }
 0x2a1   :  { %5144 = vmatprep.subr.bf16.mxu1 %v5616_v60  ;;  %v3678_v7 = vld [vmem:[#allocation3 + $0x132] sm:$0xff] }
 0x2a4   :  { %5145 = vmatpush3.bf16.msra.mxu1 %v5616_v60  ;;  %v3670_v60 = vld [vmem:[#allocation3 + $0x92] sm:$0xff] }
 0x2a5   :  { %5146 = vmatprep.subr.bf16.mxu1 %v5617_v52  ;;  %v3682_v53 = vpack.c.bf16 %v3670_v60, %v6882_v58 }
 0x2a7   :  { %5131 = vmatmul.mubr.bf16.gmra.mrb[4].mxu1 %v3075_v62 }
 0x2a8   :  { %5134 = vmatprep.mubr.bf16.mxu1 %v7052_v14  ;;  %5147 = vmatpush3.bf16.msra.mxu1 %v5617_v52  ;;  %v3686_v52 = vpack.c.bf16 %v3678_v7, %v6907_v9 }
 0x2a9   :  { %5148 = vmatprep.subr.bf16.mxu1 %v5618_v12 }
 0x2ac   :  { %5149 = vmatpush3.bf16.msra.mxu1 %v5618_v12 }
 0x2ad   :  { %5150 = vmatprep.subr.bf16.mxu1 %v5619_v44 }
 0x2af   :  { %5135 = vmatmul.mubr.bf16.gmra.mrb[8].mxu1 %v7053_v33 }
 0x2b0   :  { %5138 = vmatprep.mubr.bf16.mxu1 %v7054_v38  ;;  %5151 = vmatpush3.bf16.msra.mxu1 %v5619_v44 }
 0x2b1   :  { %5152 = vmatprep.subr.bf16.mxu1 %v5620_v23 }
 0x2b4   :  { %5153 = vmatpush3.bf16.msra.mxu1 %v5620_v23 }
 0x2b5   :  { %5154 = vmatprep.subr.bf16.mxu1 %v5621_v37 }
 0x2b7   :  { %5139 = vmatmul.mubr.bf16.gmra.mrb[12].mxu1 %v3079_v55 }
 0x2b8   :  { %5155 = vmatpush3.bf16.msra.mxu1 %v5621_v37  ;;  %5158 = vmatprep.mubr.bf16.mxu1 %v6643_v56  ;;  %v3278_v56 = vpack.c.bf16 %v6415_v2, %v6791_v49  ;;  %v3463_v49 = vld [vmem:[#allocation3 + $0x41] sm:$0xff] }
 0x2b9   :  { %5156 = vmatprep.subr.bf16.mxu1 %v5622_v21  ;;  %v3478_v2 = vpack.c.bf16 %v3464_v5, %v3463_v49 }
 0x2bc   :  { %5157 = vmatpush3.bf16.msra.mxu1 %v5622_v21 }
 0x2bd   :  { %5174 = vmatprep.subr.bf16.mxu1 %v5623_v39 }
 0x2bf   :  { %5159 = vmatmul.mubr.bf16.vlgmr.msra.gmra.mrb[0].mxu1 %v6654_v13  ;;  %v5627_v13 = vld [vmem:[%s7033_s3 + $0x1e0] sm:$0xff]  }
 0x2c0   :  { %5162 = vmatprep.mubr.bf16.mxu1 %v6669_v61  ;;  %5175 = vmatpush3.bf16.msra.mxu1 %v5623_v39  ;;  %v5628_v61 = vld [vmem:[%s7033_s3 + $0x1e8] sm:$0xff]  }
 0x2c1   :  { %5176 = vmatprep.subr.bf16.mxu1 %v5624_v48 }
 0x2c4   :  { %5177 = vmatpush3.bf16.msra.mxu1 %v5624_v48 }
 0x2c5   :  { %5178 = vmatprep.subr.bf16.mxu1 %v5625_v51 }
 0x2c7   :  { %5163 = vmatmul.mubr.bf16.gmra.mrb[4].mxu1 %v3278_v56 }
 0x2c8   :  { %5166 = vmatprep.mubr.bf16.mxu1 %v6688_v57  ;;  %5179 = vmatpush3.bf16.msra.mxu1 %v5625_v51  ;;  %v5629_v57 = vld [vmem:[%s7033_s3 + $0x1f0] sm:$0xff]  }
 0x2c9   :  { %5180 = vmatprep.subr.bf16.mxu1 %v5626_v19 }
 0x2cc   :  { %5181 = vmatpush3.bf16.msra.mxu1 %v5626_v19 }
 0x2cd   :  { %5182 = vmatprep.subr.bf16.mxu1 %v5627_v13 }
 0x2cf   :  { %5167 = vmatmul.mubr.bf16.gmra.mrb[8].mxu1 %v6697_v34  ;;  %v3477_v34 = vpack.c.bf16 %v3462_v40, %v3461_v27 }
 0x2d0   :  { %5170 = vmatprep.mubr.bf16.mxu1 %v6710_v4  ;;  %5183 = vmatpush3.bf16.msra.mxu1 %v5627_v13  ;;  %v5631_v4 = vld [vmem:[%s7033_s3 + $0x200] sm:$0xff]  }
 0x2d1   :  { %5184 = vmatprep.subr.bf16.mxu1 %v5628_v61 }
 0x2d4   :  { %5185 = vmatpush3.bf16.msra.mxu1 %v5628_v61 }
 0x2d5   :  { %5186 = vmatprep.subr.bf16.mxu1 %v5629_v57 }
 0x2d7   :  { %5171 = vmatmul.mubr.bf16.gmra.mrb[12].mxu1 %v3282_v31 }
 0x2d8   :  { %5187 = vmatpush3.bf16.msra.mxu1 %v5629_v57  ;;  %5190 = vmatprep.mubr.bf16.mxu1 %v3477_v34 }
 0x2d9   :  { %5188 = vmatprep.subr.bf16.mxu1 %v5630_v41 }
 0x2dc   :  { %5189 = vmatpush3.bf16.msra.mxu1 %v5630_v41 }
 0x2dd   :  { %5206 = vmatprep.subr.bf16.mxu1 %v5631_v4 }
 0x2df   :  { %5191 = vmatmul.mubr.bf16.vlgmr.msra.gmra.mrb[0].mxu1 %v3478_v2 }
 0x2e0   :  { %5194 = vmatprep.mubr.bf16.mxu1 %v3479_v3  ;;  %5207 = vmatpush3.bf16.msra.mxu1 %v5631_v4 }
 0x2e1   :  { %5208 = vmatprep.subr.bf16.mxu1 %v5632_v63 }
 0x2e4   :  { %5209 = vmatpush3.bf16.msra.mxu1 %v5632_v63 }
 0x2e5   :  { %5210 = vmatprep.subr.bf16.mxu1 %v5633_v18 }
 0x2e7   :  { %5195 = vmatmul.mubr.bf16.gmra.mrb[4].mxu1 %v3480_v15 }
 0x2e8   :  { %5198 = vmatprep.mubr.bf16.mxu1 %v3481_v6  ;;  %5211 = vmatpush3.bf16.msra.mxu1 %v5633_v18 }
 0x2e9   :  { %5212 = vmatprep.subr.bf16.mxu1 %v5634_v35 }
 0x2ec   :  { %5213 = vmatpush3.bf16.msra.mxu1 %v5634_v35 }
 0x2ed   :  { %5214 = vmatprep.subr.bf16.mxu1 %v5635_v26 }
 0x2ef   :  { %5199 = vmatmul.mubr.bf16.gmra.mrb[8].mxu1 %v3482_v47 }
 0x2f0   :  { %5202 = vmatprep.mubr.bf16.mxu1 %v3483_v30  ;;  %5215 = vmatpush3.bf16.msra.mxu1 %v5635_v26 }
 0x2f1   :  { %5216 = vmatprep.subr.bf16.mxu1 %v5636_v36 }
 0x2f4   :  { %5217 = vmatpush3.bf16.msra.mxu1 %v5636_v36 }
 0x2f5   :  { %5218 = vmatprep.subr.bf16.mxu1 %v5637_v0 }
 0x2f7   :  { %5203 = vmatmul.mubr.bf16.gmra.mrb[12].mxu1 %v3484_v17 }
 0x2f8   :  { %5219 = vmatpush3.bf16.msra.mxu1 %v5637_v0  ;;  %5222 = vmatprep.mubr.bf16.mxu1 %v6722_v54  ;;  %v4373_v54 = vld [vmem:[%s7035_s4] ss:$0 sm:$0xff] }
 0x2f9   :  { %5220 = vmatprep.subr.bf16.mxu1 %v5638_v42 }
 0x2fc   :  { %5221 = vmatpush3.bf16.msra.mxu1 %v5638_v42 }
 0x2ff   :  { %5223 = vmatmul.mubr.bf16.vlgmr.msra.gmra.mrb[0].mxu1 %v6729_v24 }
 0x300   :  { %5226 = vmatprep.mubr.bf16.mxu1 %v6740_v50 }
 0x307   :  { %5227 = vmatmul.mubr.bf16.gmra.mrb[4].mxu1 %v3682_v53 }
 0x308   :  { %5230 = vmatprep.mubr.bf16.mxu1 %v6752_v28 }
 0x30f   :  { %5231 = vmatmul.mubr.bf16.gmra.mrb[8].mxu1 %v6759_v43 }
 0x310   :  { %5234 = vmatprep.mubr.bf16.mxu1 %v6770_v45 }
 0x317   :  { %5235 = vmatmul.mubr.bf16.gmra.mrb[12].mxu1 %v3686_v52 }
 0x3d2   :  { %v5224_v24 = vpop.f32.mrb[0].mxu1 }
 0x3d3   :  { %v3874_v50 = vadd.f32 %v5224_v24, %v4373_v54  ;;  %v3786_v62 = vpop.f32.mrb[1].mxu1 }
 0x3d4   :  { %v3872_v12 = vadd.f32 %v4373_v54, %v3786_v62  ;;  %v5225_v58 = vpop.f32.mrb[2].mxu1 }
 0x3d5   :  { %v3890_v14 = vmax.f32 %v3874_v50, 0.0  ;;  %v3875_v44 = vadd.f32 %v5225_v58, %v4373_v54  ;;  %v3789_v28 = vpop.f32.mrb[3].mxu1 }
 0x3d6   :  { %v3888_v23 = vmax.f32 %v3872_v12, 0.0  ;;  %v3873_v43 = vadd.f32 %v4373_v54, %v3789_v28 }
 0x3d7   :  { %3906 = vst [vmem:[%s7036_s5 + $0x10] sm:$0xff] %v3890_v14  ;;  %v3891_v45 = vmax.f32 %v3875_v44, 0.0 }
 0x3d8   :  { %3904 = vst [vmem:[%s7036_s5] sm:$0xff] %v3888_v23  ;;  %v3889_v33 = vmax.f32 %v3873_v43, 0.0 }
 0x3d9   :  { %3907 = vst [vmem:[%s7036_s5 + $0x18] sm:$0xff] %v3891_v45 }
 0x3da   :  { %3905 = vst [vmem:[%s7036_s5 + $0x8] sm:$0xff] %v3889_v33  ;;  %v5228_v38 = vpop.f32.mrb[4].mxu1 }
 0x3db   :  { %v3878_v37 = vadd.f32 %v5228_v38, %v4373_v54  ;;  %v3802_v9 = vpop.f32.mrb[5].mxu1 }
 0x3dc   :  { %v3876_v55 = vadd.f32 %v4373_v54, %v3802_v9  ;;  %v5229_v21 = vpop.f32.mrb[6].mxu1 }
 0x3dd   :  { %v3894_v39 = vmax.f32 %v3878_v37, 0.0  ;;  %v3879_v48 = vadd.f32 %v5229_v21, %v4373_v54  ;;  %v3805_v51 = vpop.f32.mrb[7].mxu1 }
 0x3de   :  { %v3892_v56 = vmax.f32 %v3876_v55, 0.0  ;;  %v3877_v19 = vadd.f32 %v4373_v54, %v3805_v51 }
 0x3df   :  { %3910 = vst [vmem:[%s7036_s5 + $0x30] sm:$0xff] %v3894_v39  ;;  %v3895_v13 = vmax.f32 %v3879_v48, 0.0 }
 0x3e0   :  { %3908 = vst [vmem:[%s7036_s5 + $0x20] sm:$0xff] %v3892_v56  ;;  %v3893_v61 = vmax.f32 %v3877_v19, 0.0 }
 0x3e1   :  { %3911 = vst [vmem:[%s7036_s5 + $0x38] sm:$0xff] %v3895_v13 }
 0x3e2   :  { %3909 = vst [vmem:[%s7036_s5 + $0x28] sm:$0xff] %v3893_v61  ;;  %v5232_v57 = vpop.f32.mrb[8].mxu1 }
 0x3e3   :  { %v3882_v27 = vadd.f32 %v5232_v57, %v4373_v54  ;;  %v3818_v31 = vpop.f32.mrb[9].mxu1 }
 0x3e4   :  { %v3880_v40 = vadd.f32 %v4373_v54, %v3818_v31  ;;  %v5233_v41 = vpop.f32.mrb[10].mxu1 }
 0x3e5   :  { %v3898_v34 = vmax.f32 %v3882_v27, 0.0  ;;  %v3883_v4 = vadd.f32 %v5233_v41, %v4373_v54  ;;  %v3821_v5 = vpop.f32.mrb[11].mxu1 }
 0x3e6   :  { %v3896_v8 = vmax.f32 %v3880_v40, 0.0  ;;  %v3881_v49 = vadd.f32 %v4373_v54, %v3821_v5 }
 0x3e7   :  { %3914 = vst [vmem:[%s7036_s5 + $0x50] sm:$0xff] %v3898_v34  ;;  %v3899_v2 = vmax.f32 %v3883_v4, 0.0 }
 0x3e8   :  { %3912 = vst [vmem:[%s7036_s5 + $0x40] sm:$0xff] %v3896_v8  ;;  %v3897_v46 = vmax.f32 %v3881_v49, 0.0 }
 0x3e9   :  { %3915 = vst [vmem:[%s7036_s5 + $0x58] sm:$0xff] %v3899_v2 }
 0x3ea   :  { %3913 = vst [vmem:[%s7036_s5 + $0x48] sm:$0xff] %v3897_v46  ;;  %v5236_v63 = vpop.f32.mrb[12].mxu1 }
 0x3eb   :  { %v3886_v3 = vadd.f32 %v5236_v63, %v4373_v54  ;;  %v3834_v18 = vpop.f32.mrb[13].mxu1 }
 0x3ec   :  { %v3884_v25 = vadd.f32 %v4373_v54, %v3834_v18  ;;  %v5237_v1 = vpop.f32.mrb[14].mxu1 }
 0x3ed   :  { %v3902_v10 = vmax.f32 %v3886_v3, 0.0  ;;  %v3887_v15 = vadd.f32 %v5237_v1, %v4373_v54  ;;  %v3837_v32 = vpop.f32.mrb[15].mxu1 }
 0x3ee   :  { %v3900_v35 = vmax.f32 %v3884_v25, 0.0  ;;  %v3885_v6 = vadd.f32 %v4373_v54, %v3837_v32 }
 0x3ef   :  { %3918 = vst [vmem:[%s7036_s5 + $0x70] sm:$0xff] %v3902_v10  ;;  %v3903_v26 = vmax.f32 %v3887_v15, 0.0 }
 0x3f0   :  { %3916 = vst [vmem:[%s7036_s5 + $0x60] sm:$0xff] %v3900_v35  ;;  %v3901_v59 = vmax.f32 %v3885_v6, 0.0 }
 0x3f1   :  { %3919 = vst [vmem:[%s7036_s5 + $0x78] sm:$0xff] %v3903_v26 }
 0x3f2   :  { %3917 = vst [vmem:[%s7036_s5 + $0x68] sm:$0xff] %v3901_v59 }

</bundles_post_ra>
